<compile_context>
chip_gen: v6e
topology: v6e:2x2x1
jax: 0.10.0
libtpu: 0.0.40
codegen_flags: <defaults>
</compile_context>

<pallas_src>
import jax
import jax.numpy as jnp
from jax.experimental import pallas as pl
from jax.experimental.pallas import tpu as pltpu


# ----------------------------------------------------------------------------
# Pallas kernel: fused fc1..fc3 (+ReLU) + predictor on one (batch, point) tile.
# All tensors are channels-first; every matmul is W (out, in) @ x (in, points).
# ----------------------------------------------------------------------------
def _point_head_kernel(fine_ref, coarse_ref,
                       w1f_ref, w1c_ref, b1_ref,
                       w2_ref, b2_ref, w3_ref, b3_ref,
                       wp_ref, bp_ref, o_ref):
    cd = w2_ref.dtype  # MXU compute dtype (bf16); accumulation is f32.

    # fc1: contract over the channel (sublane) axis of the two native inputs
    # and sum — equivalent to conv1d(k=1) on cat([fine, coarse], dim=1).
    h = jnp.dot(w1f_ref[...], fine_ref[...].astype(cd),
                preferred_element_type=jnp.float32)
    h = h + jnp.dot(w1c_ref[...], coarse_ref[...].astype(cd),
                    preferred_element_type=jnp.float32)
    h = jnp.maximum(h + b1_ref[...], 0.0)

    # fc2 / fc3
    h = jnp.dot(w2_ref[...], h.astype(cd), preferred_element_type=jnp.float32)
    h = jnp.maximum(h + b2_ref[...], 0.0)
    h = jnp.dot(w3_ref[...], h.astype(cd), preferred_element_type=jnp.float32)
    h = jnp.maximum(h + b3_ref[...], 0.0)

    # Predictor: (ncls, fc) @ (fc, p_tile) -> channels-first (ncls, p_tile).
    o_ref[...] = (jnp.dot(wp_ref[...], h.astype(cd),
                          preferred_element_type=jnp.float32) + bp_ref[...])


# ----------------------------------------------------------------------------
# Parameter preparation (hoisted, done once): split w1, cast weights to bf16,
# reshape biases to (C, 1) f32 columns for lane-broadcast inside the kernel.
# Raw params use the PyTorch conv1d(k=1) layout: weight (out, in), bias (out,).
# ----------------------------------------------------------------------------
def prepare_point_head_params(raw_params, fine_channels,
                              compute_dtype=jnp.bfloat16):
    w1, b1, w2, b2, w3, b3, wp, bp = raw_params
    fc = w1.shape[0]
    w1f = w1[:, :fine_channels].astype(compute_dtype)   # (fc, C_fine)
    w1c = w1[:, fine_channels:].astype(compute_dtype)   # (fc, num_classes)
    return (w1f, w1c, b1.reshape(fc, 1).astype(jnp.float32),
            w2.astype(compute_dtype), b2.reshape(fc, 1).astype(jnp.float32),
            w3.astype(compute_dtype), b3.reshape(fc, 1).astype(jnp.float32),
            wp.astype(compute_dtype), bp.reshape(-1, 1).astype(jnp.float32))


# ----------------------------------------------------------------------------
# StandardPointHead.forward (coarse_pred_each_layer=False)
# fine: (N, C_fine, P), coarse: (N, num_classes, P) -> (N, num_classes, P) f32
# ----------------------------------------------------------------------------
def point_head_forward(fine_grained_features, coarse_features, prepared_params,
                       *, p_tile=1024):
    (w1f, w1c, b1, w2, b2, w3, b3, wp, bp) = prepared_params
    fine, coarse = fine_grained_features, coarse_features
    N, cf, P = fine.shape
    ncls = coarse.shape[1]
    fc = w2.shape[0]
    assert w1f.shape == (fc, cf) and w1c.shape == (fc, ncls)

    # Point tiles sit on the lane axis: multiple of 128, <= padded P.
    p_tile = max(128, 128 * (int(p_tile) // 128))
    p_tile = min(p_tile, 128 * pl.cdiv(P, 128))
    # v7x: keep >= 2 grid steps when possible so both TensorCores get work.
    if N * pl.cdiv(P, p_tile) < 2 and p_tile > 128:
        p_tile = 128 * max(1, (p_tile // 2) // 128)
    P_pad = p_tile * pl.cdiv(P, p_tile)
    if P_pad != P:  # only when P is not a multiple of the (128-aligned) tile
        pad = ((0, 0), (0, 0), (0, P_pad - P))
        fine = jnp.pad(fine, pad)
        coarse = jnp.pad(coarse, pad)

    grid = (N, P_pad // p_tile)

    flops = 2 * N * P_pad * ((cf + ncls) * fc + 2 * fc * fc + fc * ncls)
    bytes_accessed = int(
        fine.size * fine.dtype.itemsize
        + coarse.size * coarse.dtype.itemsize
        + sum(int(a.size) * a.dtype.itemsize for a in prepared_params)
        + N * P_pad * ncls * 4)

    const = lambda n, p: (0, 0)
    out = pl.pallas_call(
        _point_head_kernel,
        out_shape=jax.ShapeDtypeStruct((N, ncls, P_pad), jnp.float32),
        grid=grid,
        in_specs=[
            pl.BlockSpec((None, cf, p_tile), lambda n, p: (n, 0, p)),
            pl.BlockSpec((None, ncls, p_tile), lambda n, p: (n, 0, p)),
            pl.BlockSpec((fc, cf), const),     # w1 (fine part)
            pl.BlockSpec((fc, ncls), const),   # w1 (coarse part)
            pl.BlockSpec((fc, 1), const),      # b1
            pl.BlockSpec((fc, fc), const),     # w2
            pl.BlockSpec((fc, 1), const),      # b2
            pl.BlockSpec((fc, fc), const),     # w3
            pl.BlockSpec((fc, 1), const),      # b3
            pl.BlockSpec((ncls, fc), const),   # predictor weight
            pl.BlockSpec((ncls, 1), const),    # predictor bias
        ],
        out_specs=pl.BlockSpec((None, ncls, p_tile), lambda n, p: (n, 0, p)),
        compiler_params=pltpu.CompilerParams(
            dimension_semantics=("parallel", "parallel")),
        cost_estimate=pl.CostEstimate(
            flops=flops, transcendentals=0, bytes_accessed=bytes_accessed),
    )(fine, coarse, w1f, w1c, b1, w2, b2, w3, b3, wp, bp)

    return out if P_pad == P else out[:, :, :P]


# ----------------------------------------------------------------------------
# Parameter init (mirrors c2_msra_fill / normal(std=1e-3), bias=0),
# PyTorch conv1d(k=1) weight layout (out_channels, in_channels).
# ----------------------------------------------------------------------------
def init_point_head_params(key, num_classes, input_channels, fc_dim=256):
    cin = input_channels + num_classes
    k1, k2, k3, kp = jax.random.split(key, 4)
    std = (2.0 / fc_dim) ** 0.5  # kaiming_normal_(mode='fan_out', relu), k=1
    w1 = jax.random.normal(k1, (fc_dim, cin), jnp.float32) * std
    w2 = jax.random.normal(k2, (fc_dim, fc_dim), jnp.float32) * std
    w3 = jax.random.normal(k3, (fc_dim, fc_dim), jnp.float32) * std
    wp = jax.random.normal(kp, (num_classes, fc_dim), jnp.float32) * 1e-3
    b1 = jnp.zeros((fc_dim,), jnp.float32)
    b2 = jnp.zeros((fc_dim,), jnp.float32)
    b3 = jnp.zeros((fc_dim,), jnp.float32)
    bp = jnp.zeros((num_classes,), jnp.float32)
    return (w1, b1, w2, b3 * 0 + b3, wp, bp)[:0] or (w1, b1, w2, b2, w3, b3, wp, bp)


# ----------------------------------------------------------------------------
# Pure-JAX f32 reference (matches the PyTorch forward exactly)
# ----------------------------------------------------------------------------
def point_head_reference(fine, coarse, raw_params):
    w1, b1, w2, b2, w3, b3, wp, bp = raw_params
    x = jnp.concatenate([fine, coarse], axis=1)                 # (N, cin, P)
    h = jnp.maximum(jnp.einsum('oc,ncp->nop', w1, x) + b1[None, :, None], 0.0)
    h = jnp.maximum(jnp.einsum('oc,ncp->nop', w2, h) + b2[None, :, None], 0.0)
    h = jnp.maximum(jnp.einsum('oc,ncp->nop', w3, h) + b3[None, :, None], 0.0)
    return jnp.einsum('oc,ncp->nop', wp, h) + bp[None, :, None]  # (N, ncls, P)


if __name__ == "__main__":
    key = jax.random.PRNGKey(0)
    k_fine, k_coarse, k_params = jax.random.split(key, 3)

    N = 2
    num_classes = 4
    fine_channels = 16
    P = 128          # number of sampled points
    fc_dim = 256     # module default

    fine_grained_features = jax.random.normal(
        k_fine, (N, fine_channels, P), jnp.float32)
    coarse_features = jax.random.normal(
        k_coarse, (N, num_classes, P), jnp.float32)

    raw_params = init_point_head_params(
        k_params, num_classes, fine_channels, fc_dim=fc_dim)
    prepared_params = prepare_point_head_params(
        raw_params, fine_channels, compute_dtype=jnp.bfloat16)

    out = point_head_forward(
        fine_grained_features, coarse_features, prepared_params, p_tile=1024)
    out = jax.block_until_ready(out)

    ref = point_head_reference(
        fine_grained_features, coarse_features, raw_params)

    assert out.shape == (N, num_classes, P)
    assert out.dtype == jnp.float32
    assert bool(jnp.all(jnp.isfinite(out)))
    # bf16-matmul / f32-accumulate vs f32 reference: loose tolerance
    err = float(jnp.max(jnp.abs(out - ref)))
    assert err < 3e-3, f"max abs err {err}"

    print("KERNEL_OK")
</pallas_src>

<mosaic_0001>
module attributes {stable_mosaic.version = 11 : i64} {
  func.func @_point_head_kernel(%arg0: i32, %arg1: i32, %arg2: memref<1x16x128xf32, #tpu.memory_space<vmem>>, %arg3: memref<1x4x128xf32, #tpu.memory_space<vmem>>, %arg4: memref<256x16xbf16, #tpu.memory_space<vmem>>, %arg5: memref<256x4xbf16, #tpu.memory_space<vmem>>, %arg6: memref<256x1xf32, #tpu.memory_space<vmem>>, %arg7: memref<256x256xbf16, #tpu.memory_space<vmem>>, %arg8: memref<256x1xf32, #tpu.memory_space<vmem>>, %arg9: memref<256x256xbf16, #tpu.memory_space<vmem>>, %arg10: memref<256x1xf32, #tpu.memory_space<vmem>>, %arg11: memref<4x256xbf16, #tpu.memory_space<vmem>>, %arg12: memref<4x1xf32, #tpu.memory_space<vmem>>, %arg13: memref<1x4x128xf32, #tpu.memory_space<vmem>>) attributes {dimension_semantics = [#tpu.dimension_semantics<parallel>, #tpu.dimension_semantics<parallel>], iteration_bounds = array<i64: 2, 1>, scalar_prefetch = 0 : i64, scratch_operands = 0 : i64, tpu.core_type = #tpu.core_type<tc>, window_params = [{transform_indices = @transform_0, window_bounds = array<i64: 1, 16, 128>}, {transform_indices = @transform_1, window_bounds = array<i64: 1, 4, 128>}, {pipeline_mode = #tpu.pipeline_mode<synchronous>, transform_indices = @transform_2, window_bounds = array<i64: 256, 16>}, {pipeline_mode = #tpu.pipeline_mode<synchronous>, transform_indices = @transform_3, window_bounds = array<i64: 256, 4>}, {pipeline_mode = #tpu.pipeline_mode<synchronous>, transform_indices = @transform_4, window_bounds = array<i64: 256, 1>}, {pipeline_mode = #tpu.pipeline_mode<synchronous>, transform_indices = @transform_5, window_bounds = array<i64: 256, 256>}, {pipeline_mode = #tpu.pipeline_mode<synchronous>, transform_indices = @transform_6, window_bounds = array<i64: 256, 1>}, {pipeline_mode = #tpu.pipeline_mode<synchronous>, transform_indices = @transform_7, window_bounds = array<i64: 256, 256>}, {pipeline_mode = #tpu.pipeline_mode<synchronous>, transform_indices = @transform_8, window_bounds = array<i64: 256, 1>}, {pipeline_mode = #tpu.pipeline_mode<synchronous>, transform_indices = @transform_9, window_bounds = array<i64: 4, 256>}, {pipeline_mode = #tpu.pipeline_mode<synchronous>, transform_indices = @transform_10, window_bounds = array<i64: 4, 1>}, {transform_indices = @transform_11, window_bounds = array<i64: 1, 4, 128>}]} {
    %c0 = arith.constant 0 : index
    %c0_0 = arith.constant 0 : index
    %0 = vector.load %arg4[%c0, %c0_0] : memref<256x16xbf16, #tpu.memory_space<vmem>>, vector<256x16xbf16>
    %c0_1 = arith.constant 0 : index
    %c0_2 = arith.constant 0 : index
    %c0_3 = arith.constant 0 : index
    %1 = vector.load %arg2[%c0_1, %c0_2, %c0_3] : memref<1x16x128xf32, #tpu.memory_space<vmem>>, vector<1x16x128xf32>
    %2 = vector.shape_cast %1 : vector<1x16x128xf32> to vector<16x128xf32>
    %3 = arith.truncf %2 : vector<16x128xf32> to vector<16x128xbf16>
    %cst = arith.constant dense<0.000000e+00> : vector<256x128xf32>
    %4 = tpu.matmul %0, %3, %cst {dimension_numbers = #tpu.dot_dimension_numbers<[1], [0], [0], [1], [0, 0, 1, 1], [], []>} : vector<256x16xbf16>, vector<16x128xbf16>, vector<256x128xf32> -> vector<256x128xf32>
    %c0_4 = arith.constant 0 : index
    %c0_5 = arith.constant 0 : index
    %5 = vector.load %arg5[%c0_4, %c0_5] : memref<256x4xbf16, #tpu.memory_space<vmem>>, vector<256x4xbf16>
    %c0_6 = arith.constant 0 : index
    %c0_7 = arith.constant 0 : index
    %c0_8 = arith.constant 0 : index
    %6 = vector.load %arg3[%c0_6, %c0_7, %c0_8] : memref<1x4x128xf32, #tpu.memory_space<vmem>>, vector<1x4x128xf32>
    %7 = vector.shape_cast %6 : vector<1x4x128xf32> to vector<4x128xf32>
    %8 = arith.truncf %7 : vector<4x128xf32> to vector<4x128xbf16>
    %cst_9 = arith.constant dense<0.000000e+00> : vector<256x128xf32>
    %9 = tpu.matmul %5, %8, %cst_9 {dimension_numbers = #tpu.dot_dimension_numbers<[1], [0], [0], [1], [0, 0, 1, 1], [], []>} : vector<256x4xbf16>, vector<4x128xbf16>, vector<256x128xf32> -> vector<256x128xf32>
    %10 = arith.addf %4, %9 : vector<256x128xf32>
    %c0_10 = arith.constant 0 : index
    %c0_11 = arith.constant 0 : index
    %11 = vector.load %arg6[%c0_10, %c0_11] : memref<256x1xf32, #tpu.memory_space<vmem>>, vector<256x1xf32>
    %12 = vector.broadcast %11 : vector<256x1xf32> to vector<256x128xf32>
    %13 = arith.addf %10, %12 : vector<256x128xf32>
    %cst_12 = arith.constant 0.000000e+00 : f32
    %14 = vector.broadcast %cst_12 : f32 to vector<256x128xf32>
    %15 = arith.maximumf %13, %14 : vector<256x128xf32>
    %c0_13 = arith.constant 0 : index
    %c0_14 = arith.constant 0 : index
    %16 = vector.load %arg7[%c0_13, %c0_14] : memref<256x256xbf16, #tpu.memory_space<vmem>>, vector<256x256xbf16>
    %17 = arith.truncf %15 : vector<256x128xf32> to vector<256x128xbf16>
    %cst_15 = arith.constant dense<0.000000e+00> : vector<256x128xf32>
    %18 = tpu.matmul %16, %17, %cst_15 {dimension_numbers = #tpu.dot_dimension_numbers<[1], [0], [0], [1], [0, 0, 1, 1], [], []>} : vector<256x256xbf16>, vector<256x128xbf16>, vector<256x128xf32> -> vector<256x128xf32>
    %c0_16 = arith.constant 0 : index
    %c0_17 = arith.constant 0 : index
    %19 = vector.load %arg8[%c0_16, %c0_17] : memref<256x1xf32, #tpu.memory_space<vmem>>, vector<256x1xf32>
    %20 = vector.broadcast %19 : vector<256x1xf32> to vector<256x128xf32>
    %21 = arith.addf %18, %20 : vector<256x128xf32>
    %cst_18 = arith.constant 0.000000e+00 : f32
    %22 = vector.broadcast %cst_18 : f32 to vector<256x128xf32>
    %23 = arith.maximumf %21, %22 : vector<256x128xf32>
    %c0_19 = arith.constant 0 : index
    %c0_20 = arith.constant 0 : index
    %24 = vector.load %arg9[%c0_19, %c0_20] : memref<256x256xbf16, #tpu.memory_space<vmem>>, vector<256x256xbf16>
    %25 = arith.truncf %23 : vector<256x128xf32> to vector<256x128xbf16>
    %cst_21 = arith.constant dense<0.000000e+00> : vector<256x128xf32>
    %26 = tpu.matmul %24, %25, %cst_21 {dimension_numbers = #tpu.dot_dimension_numbers<[1], [0], [0], [1], [0, 0, 1, 1], [], []>} : vector<256x256xbf16>, vector<256x128xbf16>, vector<256x128xf32> -> vector<256x128xf32>
    %c0_22 = arith.constant 0 : index
    %c0_23 = arith.constant 0 : index
    %27 = vector.load %arg10[%c0_22, %c0_23] : memref<256x1xf32, #tpu.memory_space<vmem>>, vector<256x1xf32>
    %28 = vector.broadcast %27 : vector<256x1xf32> to vector<256x128xf32>
    %29 = arith.addf %26, %28 : vector<256x128xf32>
    %cst_24 = arith.constant 0.000000e+00 : f32
    %30 = vector.broadcast %cst_24 : f32 to vector<256x128xf32>
    %31 = arith.maximumf %29, %30 : vector<256x128xf32>
    %c0_25 = arith.constant 0 : index
    %c0_26 = arith.constant 0 : index
    %32 = vector.load %arg11[%c0_25, %c0_26] : memref<4x256xbf16, #tpu.memory_space<vmem>>, vector<4x256xbf16>
    %33 = arith.truncf %31 : vector<256x128xf32> to vector<256x128xbf16>
    %cst_27 = arith.constant dense<0.000000e+00> : vector<4x128xf32>
    %34 = tpu.matmul %32, %33, %cst_27 {dimension_numbers = #tpu.dot_dimension_numbers<[1], [0], [0], [1], [0, 0, 1, 1], [], []>} : vector<4x256xbf16>, vector<256x128xbf16>, vector<4x128xf32> -> vector<4x128xf32>
    %c0_28 = arith.constant 0 : index
    %c0_29 = arith.constant 0 : index
    %35 = vector.load %arg12[%c0_28, %c0_29] : memref<4x1xf32, #tpu.memory_space<vmem>>, vector<4x1xf32>
    %36 = vector.broadcast %35 : vector<4x1xf32> to vector<4x128xf32>
    %37 = arith.addf %34, %36 : vector<4x128xf32>
    %c0_30 = arith.constant 0 : index
    %c0_31 = arith.constant 0 : index
    %c0_32 = arith.constant 0 : index
    %38 = vector.load %arg13[%c0_30, %c0_31, %c0_32] : memref<1x4x128xf32, #tpu.memory_space<vmem>>, vector<1x4x128xf32>
    %39 = vector.shape_cast %38 : vector<1x4x128xf32> to vector<4x128xf32>
    %40 = vector.shape_cast %37 : vector<4x128xf32> to vector<1x4x128xf32>
    tpu.vector_store %arg13[%c0_30, %c0_31, %c0_32], %40 {strides = array<i32>} : memref<1x4x128xf32, #tpu.memory_space<vmem>>, vector<1x4x128xf32>,
    return
  }
  func.func @transform_0(%arg0: i32, %arg1: i32) -> (i32, i32, i32) {
    %c0_i32 = arith.constant 0 : i32
    %c0_i32_0 = arith.constant 0 : i32
    return %arg0, %c0_i32, %arg1 : i32, i32, i32
  }
  func.func @transform_1(%arg0: i32, %arg1: i32) -> (i32, i32, i32) {
    %c0_i32 = arith.constant 0 : i32
    %c0_i32_0 = arith.constant 0 : i32
    return %arg0, %c0_i32, %arg1 : i32, i32, i32
  }
  func.func @transform_2(%arg0: i32, %arg1: i32) -> (i32, i32) {
    %c0_i32 = arith.constant 0 : i32
    %c0_i32_0 = arith.constant 0 : i32
    %c0_i32_1 = arith.constant 0 : i32
    return %c0_i32, %c0_i32_0 : i32, i32
  }
  func.func @transform_3(%arg0: i32, %arg1: i32) -> (i32, i32) {
    %c0_i32 = arith.constant 0 : i32
    %c0_i32_0 = arith.constant 0 : i32
    %c0_i32_1 = arith.constant 0 : i32
    return %c0_i32, %c0_i32_0 : i32, i32
  }
  func.func @transform_4(%arg0: i32, %arg1: i32) -> (i32, i32) {
    %c0_i32 = arith.constant 0 : i32
    %c0_i32_0 = arith.constant 0 : i32
    %c0_i32_1 = arith.constant 0 : i32
    return %c0_i32, %c0_i32_0 : i32, i32
  }
  func.func @transform_5(%arg0: i32, %arg1: i32) -> (i32, i32) {
    %c0_i32 = arith.constant 0 : i32
    %c0_i32_0 = arith.constant 0 : i32
    %c0_i32_1 = arith.constant 0 : i32
    return %c0_i32, %c0_i32_0 : i32, i32
  }
  func.func @transform_6(%arg0: i32, %arg1: i32) -> (i32, i32) {
    %c0_i32 = arith.constant 0 : i32
    %c0_i32_0 = arith.constant 0 : i32
    %c0_i32_1 = arith.constant 0 : i32
    return %c0_i32, %c0_i32_0 : i32, i32
  }
  func.func @transform_7(%arg0: i32, %arg1: i32) -> (i32, i32) {
    %c0_i32 = arith.constant 0 : i32
    %c0_i32_0 = arith.constant 0 : i32
    %c0_i32_1 = arith.constant 0 : i32
    return %c0_i32, %c0_i32_0 : i32, i32
  }
  func.func @transform_8(%arg0: i32, %arg1: i32) -> (i32, i32) {
    %c0_i32 = arith.constant 0 : i32
    %c0_i32_0 = arith.constant 0 : i32
    %c0_i32_1 = arith.constant 0 : i32
    return %c0_i32, %c0_i32_0 : i32, i32
  }
  func.func @transform_9(%arg0: i32, %arg1: i32) -> (i32, i32) {
    %c0_i32 = arith.constant 0 : i32
    %c0_i32_0 = arith.constant 0 : i32
    %c0_i32_1 = arith.constant 0 : i32
    return %c0_i32, %c0_i32_0 : i32, i32
  }
  func.func @transform_10(%arg0: i32, %arg1: i32) -> (i32, i32) {
    %c0_i32 = arith.constant 0 : i32
    %c0_i32_0 = arith.constant 0 : i32
    %c0_i32_1 = arith.constant 0 : i32
    return %c0_i32, %c0_i32_0 : i32, i32
  }
  func.func @transform_11(%arg0: i32, %arg1: i32) -> (i32, i32, i32) {
    %c0_i32 = arith.constant 0 : i32
    %c0_i32_0 = arith.constant 0 : i32
    return %arg0, %c0_i32, %arg1 : i32, i32, i32
  }
}

</mosaic_0001>

<bundles_post_ra>
// kernel: tpu_custom_call.1
= control target key start
LH: loop header
LB: loop body
LE: loop exit
PB: predicated region body
PF: predicated region fallthrough
CT: control target
= control target key end

     0   :  { %16 = vsyncpa [#allocation3], 0  ;;  %s4612_s0 = inlined_call_operand.vmem [shape: f32[2,16,128], index: 0, kind: input, shape index: {}]   ;;  %s4613_s1 = inlined_call_operand.vmem [shape: f32[2,4,128], index: 1, kind: input, shape index: {}]   ;;  %s4614_s2 = inlined_call_operand.vmem [shape: bf16[256,16], index: 2, kind: input, shape index: {}]   ;;  %s4615_s3 = inlined_call_operand.vmem [shape: bf16[256,4], index: 3, kind: input, shape index: {}]   ;;  %s4616_s4 = inlined_call_operand.vmem [shape: f32[256,1], index: 4, kind: input, shape index: {}]   ;;  %s4617_s5 = inlined_call_operand.vmem [shape: bf16[256,256], index: 5, kind: input, shape index: {}]   ;;  %s4618_s6 = inlined_call_operand.vmem [shape: f32[256,1], index: 6, kind: input, shape index: {}]   ;;  %s4619_s7 = inlined_call_operand.vmem [shape: bf16[256,256], index: 7, kind: input, shape index: {}]   ;;  %s4620_s8 = inlined_call_operand.vmem [shape: f32[256,1], index: 8, kind: input, shape index: {}]   ;;  %s4621_s9 = inlined_call_operand.vmem [shape: bf16[4,256], index: 9, kind: input, shape index: {}]   ;;  %s4622_s10 = inlined_call_operand.vmem [shape: f32[4,1], index: 10, kind: input, shape index: {}]   ;;  %s4623_s11 = inlined_call_operand.hbm [shape: f32[2,4,128], index: 11, kind: output, shape index: {}]  }
   0x1   :  { %18 = vsyncpa [#allocation3 + $0x1], 0  ;;  %s3531_s17 = smov 0   ;;  %s3533_s18 = smov 0  }
   0x2   :  { %s3535_s19 = smov 0   ;;  %s3537_s20 = smov 0  }
   0x3   :  { %s3539_s21 = smov 0   ;;  %s3541_s22 = smov 0  }
   0x4 LB: > { %4627 = sst [smem:[#allocation5_spill]] %s3455_s19  ;;  %s2713_s23 = sadd.s32 4294967295, %s3467_s22   ;;  %s3467_s22 = sphi %s3541_s22, %s24_s22   ;;  %s3463_s21 = sphi %s3539_s21, %s4680_s21   ;;  %s3459_s20 = sphi %s3537_s20, %s4683_s20   ;;  %s3455_s19 = sphi %s3535_s19, %s4678_s19   ;;  %s3451_s18 = sphi %s3533_s18, %s4682_s18   ;;  %s3447_s17 = sphi %s3531_s17, %s4681_s17  }
   0x5   : > { %4628 = sst [smem:[#allocation6_spill]] %s3463_s21  ;;  %s2714_s24 = sadd.s32 4294967294, %s3467_s22  }
   0x6   : > { %s36_s25 = sadd.s32 1, %s3463_s21  ;;  %s290_s26 = sadd.s32 1, %s3455_s19 }
   0x7   : > { %p38_p0 = scmp.ge.s32.totalorder %s36_s25, 2  ;;  %p300_p1 = scmp.ne.s32.totalorder %s3455_s19, %s3451_s18 }
   0x8   : > { %p301_p2 = scmp.eq.s32.totalorder %s2713_s23, 1  ;;  %p306_p3 = scmp.ne.s32.totalorder %s3451_s18, %s3447_s17 }
   0x9   : > { %s4685_s25 = smov (%p38_p0, %s36_s25), 0  ;;  %p307_p5 = scmp.eq.s32.totalorder %s2714_s24, 1 }
   0xa   : > { %4629 = sst [smem:[#allocation7_spill]] %s4685_s25  ;;  %p3571_p4 = por %p301_p2, %p300_p1 }
   0xb   : > { %s285_s28 = ssub.s32 %s3463_s21, %s4685_s25  ;;  %p2717_p6 = scmp.ge.s32.totalorder %s3467_s22, 1 }
   0xc   : > { %p288_p7 = scmp.eq.s32.totalorder %s285_s28, 0  ;;  %p3578_p8 = por %p307_p5, %p306_p3 }
   0xd   : > { %p373_p9 = scmp.lt.s32.totalorder %s3467_s22, 3 }
   0xe   : > { %s3584_s30 = scalar_select %p288_p7, %s3455_s19, %s290_s26  }
   0xf   : > { %p374_p10 = pnand %p2717_p6, %p373_p9 }
  0x10   : > { %4632 = sst [smem:[#allocation8_spill]] %s3584_s30 }
  0x11   : > { %377 = sbr.rel (%p374_p10) target bundleno = 1260 (0x4ec), region = 64 }
  0x16   : > { %v1122_v0 = vld [vmem:[%s4616_s4 + $0xf0] sm:$0xff]  ;;  %p423_p11 = scmp.lt.s32.totalorder %s3459_s20, 1  ;;  %v3469_v2 = vmov 0   ;;  %v1123_v3 = vld [vmem:[%s4616_s4 + $0xf8] sm:$0xff]  ;;  %vm588_vm0 = vcmask 31744   ;;  %vm882_vm1 = vcmask 130048  }
  0x17   : > { %v1106_v1 = vld [vmem:[%s4616_s4 + $0x70] sm:$0xff]  ;;  %3262 = vset.pattern.permute.xlu1 %v3469_v2  ;;  %3261 = vset.pattern.permute.xlu0 %v3469_v2  ;;  %v1107_v4 = vld [vmem:[%s4616_s4 + $0x78] sm:$0xff]  ;;  %v3263_v5 = vld [vmem:[%s4615_s3] sm:$0xff]   ;;  %vm637_vm2 = vcmask 1041408   ;;  %s2852_s12 = sshll.u32 %s3459_s20, 6 }
  0x18   : > { %1276 = vperm.xlu0 %3261, %v1122_v0   ;;  %1196 = vperm.xlu1 %3262, %v1106_v1   ;;  %s424_s28 = scalar_select %p423_p11, %s3459_s20, 1  ;;  %v3264_v6 = vld [vmem:[%s4614_s2] sm:$0xff]   ;;  %v1121_v13 = vld [vmem:[%s4616_s4 + $0xe8] sm:$0xff]  ;;  %v3267_v19 = vld [vmem:[%s4615_s3 + $0x10] sm:$0xff]  }
  0x19   : > { %3138 = vmatprep.mubr.msk.bf16.mxu0 %vm588_vm0, %v3263_v5  ;;  %3172 = vmatprep.mubr.msk.bf16.mxu1 %vm882_vm1, %v3264_v6  ;;  %v1120_v12 = vld [vmem:[%s4616_s4 + $0xe0] sm:$0xff]  ;;  %v3265_v14 = vld [vmem:[%s4615_s3 + $0x8] sm:$0xff]   ;;  %v3268_v20 = vld [vmem:[%s4614_s2 + $0x10] sm:$0xff]   ;;  %s4572_s14 = scalar_lea.hbm %s4623_s11, %s2852_s12  ;;  %s3470_s20 = smov [#allocation2]  }
  0x1a   : > { %s2721_s25 = sshll.u32 %s424_s28, 2  ;;  %s2855_s16 = sshll.u32 %s424_s28, 4  ;;  %v3266_v16 = vld [vmem:[%s4614_s2 + $0x8] sm:$0xff]   ;;  %v1104_v18 = vld [vmem:[%s4616_s4 + $0x60] sm:$0xff]  ;;  %v1119_v21 = vld [vmem:[%s4616_s4 + $0xd8] sm:$0xff] }
  0x1b   : > { %s437_s26 = scalar_lea.vmem %s4613_s1, %s2721_s25  ;;  %s430_s19 = scalar_lea.vmem %s4612_s0, %s2855_s16  ;;  %v1105_v17 = vld [vmem:[%s4616_s4 + $0x68] sm:$0xff]  ;;  %v1118_v22 = vld [vmem:[%s4616_s4 + $0xd0] sm:$0xff]  ;;  %v3269_v23 = vld [vmem:[%s4615_s3 + $0x18] sm:$0xff]  }
  0x1c   : > { %1281 = vperm.xlu0 %3261, %v1123_v3   ;;  %1201 = vperm.xlu1 %3262, %v1107_v4   ;;  %v506_v7 = vld [vmem:[%s437_s26] sm:$0xf]  ;;  %v472_v9 = vld [vmem:[%s430_s19 + $0x8] sm:$0xff]  ;;  %v3270_v24 = vld [vmem:[%s4614_s2 + $0x18] sm:$0xff]   ;;  %s420_s26 = sand.u32 1, %s3451_s18   ;;  %s3395_s16 = sshll.u32 %s3470_s20, 4  ;;  %s3396_s16 = int_to_ptr.vmem [resolvable:$false] %s3395_s16 }
  0x1d   : > { %v471_v8 = vld [vmem:[%s430_s19] sm:$0xff]  ;;  %v507_v10 = vpack.c.bf16 %v506_v7, %v506_v7  ;;  %v1103_v25 = vld [vmem:[%s4616_s4 + $0x58] sm:$0xff]  ;;  %v1102_v26 = vld [vmem:[%s4616_s4 + $0x50] sm:$0xff]  ;;  %s2718_s28 = sshll.u32 %s420_s26, 2  ;;  %s2610_s15 = scalar_lea.sflag [#allocation3], %s420_s26 }
  0x1e   : > { %v473_v11 = vpack.c.bf16 %v472_v9, %v471_v8  ;;  %v3271_v27 = vld [vmem:[%s4615_s3 + $0x20] sm:$0xff]   ;;  %v1117_v29 = vld [vmem:[%s4616_s4 + $0xc8] sm:$0xff]  ;;  %v3275_v35 = vld [vmem:[%s4615_s3 + $0x30] sm:$0xff]   ;;  %s422_s13 = scalar_lea.vmem [#allocation2], %s2718_s28  ;;  %s3397_s23 = scalar_lea.vmem %s3396_s16, 128 }
  0x1f   : > { %3204 = vmatprep.subr.msk.bf16.mxu0 %vm637_vm2, %v507_v10  ;;  %v639_v15 = vsel %vm637_vm2, %v507_v10, 0  ;;  %v3272_v28 = vld [vmem:[%s4614_s2 + $0x20] sm:$0xff]   ;;  %v3273_v31 = vld [vmem:[%s4615_s3 + $0x28] sm:$0xff]   ;;  %v3276_v36 = vld [vmem:[%s4614_s2 + $0x30] sm:$0xff]   ;;  %s2624_s25 = sshll.u32 %s422_s13, 4  ;;  %s2625_s25 = int_to_ptr.vmem [resolvable:$true] %s2624_s25 }
  0x20   : > { %3170 = vmatprep.subr.bf16.mxu1 %v473_v11  ;;  %1266 = vperm.xlu0 %3261, %v1120_v12   ;;  %v1116_v30 = vld [vmem:[%s4616_s4 + $0xc0] sm:$0xff]  ;;  %v3274_v32 = vld [vmem:[%s4614_s2 + $0x28] sm:$0xff]   ;;  %v1115_v37 = vld [vmem:[%s4616_s4 + $0xb8] sm:$0xff]  ;;  %s3391_s19 = scalar_lea.vmem %s2625_s25, 64  ;;  %p3398_p1 = scmp.lt.s32.totalorder %s2625_s25, %s3396_s16 }
  0x21   : > { %1271 = vperm.xlu1 %3262, %v1121_v13   ;;  %3137 = vmatpush3.bf16.msra.mxu0 %v639_v15  ;;  %v1101_v33 = vld [vmem:[%s4616_s4 + $0x48] sm:$0xff]  ;;  %v1100_v34 = vld [vmem:[%s4616_s4 + $0x40] sm:$0xff]  ;;  %v1114_v38 = vld [vmem:[%s4616_s4 + $0xb0] sm:$0xff]  ;;  %p3392_p12 = scmp.ne.s32.totalorder %s2625_s25, %s3391_s19  ;;  %p3399_p2 = scmp.lt.s32.totalorder %s3397_s23, %s3391_s19 }
  0x22   : > { %3171 = vmatpush3.bf16.msra.mxu1 %v473_v11  ;;  %v3277_v39 = vld [vmem:[%s4615_s3 + $0x38] sm:$0xff]   ;;  %v1098_v42 = vld [vmem:[%s4616_s4 + $0x30] sm:$0xff]  ;;  %v3279_v43 = vld [vmem:[%s4615_s3 + $0x40] sm:$0xff]  }
  0x23   : > { %v3278_v40 = vld [vmem:[%s4614_s2 + $0x38] sm:$0xff]   ;;  %v3280_v44 = vld [vmem:[%s4614_s2 + $0x40] sm:$0xff]   ;;  %v1113_v45 = vld [vmem:[%s4616_s4 + $0xa8] sm:$0xff]  ;;  %p3393_p13 = pnand %p3392_p12, %p3571_p4  ;;  %p3400_p3 = por %p3399_p2, %p3398_p1 }
  0x24   : > { %3139 = vmatmul.mubr.msk.bf16.vlgmr.msra.gmra.mxu0 %vm588_vm0, %v3265_v14  ;;  %1186 = vperm.xlu0 %3261, %v1104_v18   ;;  %v1099_v41 = vld [vmem:[%s4616_s4 + $0x38] sm:$0xff]  ;;  %v1112_v46 = vld [vmem:[%s4616_s4 + $0xa0] sm:$0xff]  ;;  %v3281_v47 = vld [vmem:[%s4615_s3 + $0x48] sm:$0xff]  }
  0x25   : > { %3173 = vmatmul.mubr.msk.bf16.vlgmr.msra.gmra.mxu1 %vm882_vm1, %v3266_v16  ;;  %1191 = vperm.xlu1 %3262, %v1105_v17   ;;  %v3282_v48 = vld [vmem:[%s4614_s2 + $0x48] sm:$0xff]   ;;  %v1096_v50 = vld [vmem:[%s4616_s4 + $0x20] sm:$0xff]  ;;  %v3283_v51 = vld [vmem:[%s4615_s3 + $0x50] sm:$0xff]   ;;  %p3394_p0 = pneg %p3393_p13 }
  0x26   : > { %3142 = vmatprep.mubr.msk.bf16.mxu0 %vm588_vm0, %v3267_v19  ;;  %3176 = vmatprep.mubr.msk.bf16.mxu1 %vm882_vm1, %v3268_v20  ;;  %v1097_v49 = vld [vmem:[%s4616_s4 + $0x28] sm:$0xff]  ;;  %v3284_v52 = vld [vmem:[%s4614_s2 + $0x50] sm:$0xff]   ;;  %v1111_v53 = vld [vmem:[%s4616_s4 + $0x98] sm:$0xff] }
  0x27   : > { %v1110_v54 = vld [vmem:[%s4616_s4 + $0x90] sm:$0xff]  ;;  %v3285_v55 = vld [vmem:[%s4615_s3 + $0x58] sm:$0xff]   ;;  %v3287_v59 = vld [vmem:[%s4615_s3 + $0x60] sm:$0xff]   ;;  %p3401_p5 = pnand %p3400_p3, %p3394_p0 }
  0x28   : > { %1256 = vperm.xlu0 %3261, %v1118_v22   ;;  %v3286_v56 = vld [vmem:[%s4614_s2 + $0x58] sm:$0xff]   ;;  %v1094_v58 = vld [vmem:[%s4616_s4 + $0x10] sm:$0xff]  ;;  %v3288_v60 = vld [vmem:[%s4614_s2 + $0x60] sm:$0xff]  }
  0x29   : > { %1261 = vperm.xlu1 %3262, %v1119_v21   ;;  %v1095_v57 = vld [vmem:[%s4616_s4 + $0x18] sm:$0xff]  ;;  %v1109_v61 = vld [vmem:[%s4616_s4 + $0x88] sm:$0xff]  ;;  %v1108_v62 = vld [vmem:[%s4616_s4 + $0x80] sm:$0xff] }
  0x2a   : > { %v3289_v63 = vld [vmem:[%s4615_s3 + $0x68] sm:$0xff]   ;;  %v1092_v2 = vld [vmem:[%s4616_s4] sm:$0xff]  ;;  %v3291_v3 = vld [vmem:[%s4615_s3 + $0x70] sm:$0xff]  }
  0x2b   : > { %v3290_v0 = vld [vmem:[%s4614_s2 + $0x68] sm:$0xff]   ;;  %v3292_v4 = vld [vmem:[%s4614_s2 + $0x70] sm:$0xff]   ;;  %v1427_v5 = vld [vmem:[%s4618_s6 + $0xf8] sm:$0xff] }
  0x2c   : > { %3143 = vmatmul.mubr.msk.bf16.gmra.mxu0 %vm588_vm0, %v3269_v23  ;;  %1176 = vperm.xlu0 %3261, %v1102_v26   ;;  %v1093_v1 = vld [vmem:[%s4616_s4 + $0x8] sm:$0xff]  ;;  %v1426_v6 = vld [vmem:[%s4618_s6 + $0xf0] sm:$0xff]  ;;  %v3293_v7 = vld [vmem:[%s4615_s3 + $0x78] sm:$0xff]  }
  0x2d   : > { %3177 = vmatmul.mubr.msk.bf16.gmra.mxu1 %vm882_vm1, %v3270_v24  ;;  %1181 = vperm.xlu1 %3262, %v1103_v25   ;;  %v3294_v8 = vld [vmem:[%s4614_s2 + $0x78] sm:$0xff]   ;;  %v1410_v10 = vld [vmem:[%s4618_s6 + $0x70] sm:$0xff]  ;;  %v1425_v11 = vld [vmem:[%s4618_s6 + $0xe8] sm:$0xff] }
  0x2e   : > { %3146 = vmatprep.mubr.msk.bf16.mxu0 %vm588_vm0, %v3271_v27  ;;  %3180 = vmatprep.mubr.msk.bf16.mxu1 %vm882_vm1, %v3272_v28  ;;  %v1411_v9 = vld [vmem:[%s4618_s6 + $0x78] sm:$0xff]  ;;  %v1424_v12 = vld [vmem:[%s4618_s6 + $0xe0] sm:$0xff]  ;;  %v1409_v13 = vld [vmem:[%s4618_s6 + $0x68] sm:$0xff] }
  0x2f   : > { %v1408_v14 = vld [vmem:[%s4618_s6 + $0x60] sm:$0xff]  ;;  %v1423_v15 = vld [vmem:[%s4618_s6 + $0xd8] sm:$0xff]  ;;  %v1422_v16 = vld [vmem:[%s4618_s6 + $0xd0] sm:$0xff] }
  0x30   : > { %1246 = vperm.xlu0 %3261, %v1116_v30   ;;  %v1407_v17 = vld [vmem:[%s4618_s6 + $0x58] sm:$0xff]  ;;  %v1406_v18 = vld [vmem:[%s4618_s6 + $0x50] sm:$0xff]  ;;  %v1421_v19 = vld [vmem:[%s4618_s6 + $0xc8] sm:$0xff] }
  0x31   : > { %1251 = vperm.xlu1 %3262, %v1117_v29   ;;  %v1420_v20 = vld [vmem:[%s4618_s6 + $0xc0] sm:$0xff]  ;;  %v1405_v21 = vld [vmem:[%s4618_s6 + $0x48] sm:$0xff]  ;;  %v1419_v23 = vld [vmem:[%s4618_s6 + $0xb8] sm:$0xff] }
  0x32   : > { %v1404_v22 = vld [vmem:[%s4618_s6 + $0x40] sm:$0xff]  ;;  %v1418_v24 = vld [vmem:[%s4618_s6 + $0xb0] sm:$0xff]  ;;  %v1403_v25 = vld [vmem:[%s4618_s6 + $0x38] sm:$0xff] }
  0x33   : > { %v1402_v26 = vld [vmem:[%s4618_s6 + $0x30] sm:$0xff]  ;;  %v1417_v27 = vld [vmem:[%s4618_s6 + $0xa8] sm:$0xff]  ;;  %v1416_v28 = vld [vmem:[%s4618_s6 + $0xa0] sm:$0xff] }
  0x34   : > { %3147 = vmatmul.mubr.msk.bf16.gmra.mxu0 %vm588_vm0, %v3273_v31  ;;  %1166 = vperm.xlu0 %3261, %v1100_v34   ;;  %v1401_v29 = vld [vmem:[%s4618_s6 + $0x28] sm:$0xff]  ;;  %v1400_v30 = vld [vmem:[%s4618_s6 + $0x20] sm:$0xff]  ;;  %v1415_v31 = vld [vmem:[%s4618_s6 + $0x98] sm:$0xff] }
  0x35   : > { %3181 = vmatmul.mubr.msk.bf16.gmra.mxu1 %vm882_vm1, %v3274_v32  ;;  %1171 = vperm.xlu1 %3262, %v1101_v33   ;;  %v1414_v32 = vld [vmem:[%s4618_s6 + $0x90] sm:$0xff]  ;;  %v1399_v33 = vld [vmem:[%s4618_s6 + $0x18] sm:$0xff] }
  0x36   : > { %3150 = vmatprep.mubr.msk.bf16.mxu0 %vm588_vm0, %v3275_v35  ;;  %3184 = vmatprep.mubr.msk.bf16.mxu1 %vm882_vm1, %v3276_v36  ;;  %v1398_v34 = vld [vmem:[%s4618_s6 + $0x10] sm:$0xff]  ;;  %v1413_v35 = vld [vmem:[%s4618_s6 + $0x88] sm:$0xff]  ;;  %v1412_v36 = vld [vmem:[%s4618_s6 + $0x80] sm:$0xff] }
  0x38   : > { %1236 = vperm.xlu0 %3261, %v1114_v38   ;;  %v1396_v38 = vld [vmem:[%s4618_s6] sm:$0xff] }
  0x39   : > { %1241 = vperm.xlu1 %3262, %v1115_v37   ;;  %v1397_v37 = vld [vmem:[%s4618_s6 + $0x8] sm:$0xff] }
  0x3c   : > { %3151 = vmatmul.mubr.msk.bf16.gmra.mxu0 %vm588_vm0, %v3277_v39  ;;  %1156 = vperm.xlu0 %3261, %v1098_v42   ;;  %v2019_v42 = vld [vmem:[%s4620_s8 + $0xf0] sm:$0xff] }
  0x3d   : > { %3185 = vmatmul.mubr.msk.bf16.gmra.mxu1 %vm882_vm1, %v3278_v40  ;;  %1161 = vperm.xlu1 %3262, %v1099_v41   ;;  %v2020_v41 = vld [vmem:[%s4620_s8 + $0xf8] sm:$0xff] }
  0x3e   : > { %3154 = vmatprep.mubr.msk.bf16.mxu0 %vm588_vm0, %v3279_v43  ;;  %3188 = vmatprep.mubr.msk.bf16.mxu1 %vm882_vm1, %v3280_v44 }
  0x40   : > { %1226 = vperm.xlu0 %3261, %v1112_v46   ;;  %v2003_v46 = vld [vmem:[%s4620_s8 + $0x70] sm:$0xff] }
  0x41   : > { %1231 = vperm.xlu1 %3262, %v1113_v45   ;;  %v2004_v45 = vld [vmem:[%s4620_s8 + $0x78] sm:$0xff] }
  0x44   : > { %3155 = vmatmul.mubr.msk.bf16.gmra.mxu0 %vm588_vm0, %v3281_v47  ;;  %1146 = vperm.xlu0 %3261, %v1096_v50   ;;  %v2017_v50 = vld [vmem:[%s4620_s8 + $0xe0] sm:$0xff] }
  0x45   : > { %3189 = vmatmul.mubr.msk.bf16.gmra.mxu1 %vm882_vm1, %v3282_v48  ;;  %1151 = vperm.xlu1 %3262, %v1097_v49   ;;  %v2018_v49 = vld [vmem:[%s4620_s8 + $0xe8] sm:$0xff] }
  0x46   : > { %3158 = vmatprep.mubr.msk.bf16.mxu0 %vm588_vm0, %v3283_v51  ;;  %3192 = vmatprep.mubr.msk.bf16.mxu1 %vm882_vm1, %v3284_v52  ;;  %v2002_v52 = vld [vmem:[%s4620_s8 + $0x68] sm:$0xff] }
  0x48   : > { %1216 = vperm.xlu0 %3261, %v1110_v54  }
  0x49   : > { %1221 = vperm.xlu1 %3262, %v1111_v53   ;;  %v2001_v53 = vld [vmem:[%s4620_s8 + $0x60] sm:$0xff] }
  0x4c   : > { %3159 = vmatmul.mubr.msk.bf16.gmra.mxu0 %vm588_vm0, %v3285_v55  ;;  %1136 = vperm.xlu0 %3261, %v1094_v58   ;;  %v2016_v55 = vld [vmem:[%s4620_s8 + $0xd8] sm:$0xff] }
  0x4d   : > { %3193 = vmatmul.mubr.msk.bf16.gmra.mxu1 %vm882_vm1, %v3286_v56  ;;  %1141 = vperm.xlu1 %3262, %v1095_v57   ;;  %v2015_v56 = vld [vmem:[%s4620_s8 + $0xd0] sm:$0xff] }
  0x4e   : > { %3162 = vmatprep.mubr.msk.bf16.mxu0 %vm588_vm0, %v3287_v59  ;;  %3196 = vmatprep.mubr.msk.bf16.mxu1 %vm882_vm1, %v3288_v60  ;;  %v2000_v59 = vld [vmem:[%s4620_s8 + $0x58] sm:$0xff]  ;;  %v1999_v60 = vld [vmem:[%s4620_s8 + $0x50] sm:$0xff] }
  0x50   : > { %1206 = vperm.xlu0 %3261, %v1108_v62   ;;  %v2014_v62 = vld [vmem:[%s4620_s8 + $0xc8] sm:$0xff] }
  0x51   : > { %1211 = vperm.xlu1 %3262, %v1109_v61  }
  0x54   : > { %3163 = vmatmul.mubr.msk.bf16.gmra.mxu0 %vm588_vm0, %v3289_v63  ;;  %1126 = vperm.xlu0 %3261, %v1092_v2   ;;  %v2013_v63 = vld [vmem:[%s4620_s8 + $0xc0] sm:$0xff] }
  0x55   : > { %3197 = vmatmul.mubr.msk.bf16.gmra.mxu1 %vm882_vm1, %v3290_v0  ;;  %1131 = vperm.xlu1 %3262, %v1093_v1   ;;  %v1998_v1 = vld [vmem:[%s4620_s8 + $0x48] sm:$0xff]  ;;  %v1997_v2 = vld [vmem:[%s4620_s8 + $0x40] sm:$0xff] }
  0x56   : > { %3166 = vmatprep.mubr.msk.bf16.mxu0 %vm588_vm0, %v3291_v3  ;;  %3200 = vmatprep.mubr.msk.bf16.mxu1 %vm882_vm1, %v3292_v4 }
  0x58   : > { %1580 = vperm.xlu0 %3261, %v1426_v6   ;;  %v2011_v6 = vld [vmem:[%s4620_s8 + $0xb0] sm:$0xff] }
  0x59   : > { %1585 = vperm.xlu1 %3262, %v1427_v5   ;;  %v2012_v5 = vld [vmem:[%s4620_s8 + $0xb8] sm:$0xff] }
  0x5c   : > { %3167 = vmatmul.mubr.msk.bf16.gmra.mxu0 %vm588_vm0, %v3293_v7  ;;  %1500 = vperm.xlu0 %3261, %v1410_v10  }
  0x5d   : > { %3201 = vmatmul.mubr.msk.bf16.gmra.mxu1 %vm882_vm1, %v3294_v8  ;;  %1505 = vperm.xlu1 %3262, %v1411_v9   ;;  %v1996_v8 = vld [vmem:[%s4620_s8 + $0x38] sm:$0xff]  ;;  %v1995_v9 = vld [vmem:[%s4620_s8 + $0x30] sm:$0xff] }
  0x60   : > { %1570 = vperm.xlu0 %3261, %v1424_v12   ;;  %v2009_v12 = vld [vmem:[%s4620_s8 + $0xa0] sm:$0xff] }
  0x61   : > { %1575 = vperm.xlu1 %3262, %v1425_v11   ;;  %v2010_v11 = vld [vmem:[%s4620_s8 + $0xa8] sm:$0xff] }
  0x64   : > { %1490 = vperm.xlu0 %3261, %v1408_v14  }
  0x65   : > { %1495 = vperm.xlu1 %3262, %v1409_v13  }
  0x68   : > { %1560 = vperm.xlu0 %3261, %v1422_v16   ;;  %v1993_v16 = vld [vmem:[%s4620_s8 + $0x20] sm:$0xff] }
  0x69   : > { %1565 = vperm.xlu1 %3262, %v1423_v15   ;;  %v1994_v15 = vld [vmem:[%s4620_s8 + $0x28] sm:$0xff] }
  0x6c   : > { %1480 = vperm.xlu0 %3261, %v1406_v18   ;;  %v2008_v18 = vld [vmem:[%s4620_s8 + $0x98] sm:$0xff] }
  0x6d   : > { %1485 = vperm.xlu1 %3262, %v1407_v17  }
  0x70   : > { %1550 = vperm.xlu0 %3261, %v1420_v20   ;;  %v3297_v20 = vld [vmem:[%s4617_s5 + $0x4] ss:$8 sps:$4 sm:$0xff]  }
  0x71   : > { %1555 = vperm.xlu1 %3262, %v1421_v19   ;;  %v2007_v19 = vld [vmem:[%s4620_s8 + $0x90] sm:$0xff]  ;;  %1780 = vmatprep.mubr.bf16.mxu0 %v3297_v20 }
  0x74   : > { %1470 = vperm.xlu0 %3261, %v1404_v22   ;;  %v1992_v22 = vld [vmem:[%s4620_s8 + $0x18] sm:$0xff] }
  0x75   : > { %1475 = vperm.xlu1 %3262, %v1405_v21  }
  0x78   : > { %1540 = vperm.xlu0 %3261, %v1418_v24  }
  0x79   : > { %1545 = vperm.xlu1 %3262, %v1419_v23   ;;  %v1991_v23 = vld [vmem:[%s4620_s8 + $0x10] sm:$0xff] }
  0x7c   : > { %1460 = vperm.xlu0 %3261, %v1402_v26   ;;  %v2006_v26 = vld [vmem:[%s4620_s8 + $0x88] sm:$0xff] }
  0x7d   : > { %1465 = vperm.xlu1 %3262, %v1403_v25  }
  0x80   : > { %1530 = vperm.xlu0 %3261, %v1416_v28  }
  0x81   : > { %1535 = vperm.xlu1 %3262, %v1417_v27   ;;  %v2005_v27 = vld [vmem:[%s4620_s8 + $0x80] sm:$0xff] }
  0x84   : > { %1450 = vperm.xlu0 %3261, %v1400_v30   ;;  %v1989_v30 = vld [vmem:[%s4620_s8] sm:$0xff] }
  0x85   : > { %1455 = vperm.xlu1 %3262, %v1401_v29   ;;  %v1990_v29 = vld [vmem:[%s4620_s8 + $0x8] sm:$0xff] }
  0x88   : > { %1520 = vperm.xlu0 %3261, %v1414_v32   ;;  %v2551_v32 = vld [vmem:[%s4622_s10] sm:$0xf] }
  0x89   : > { %1525 = vperm.xlu1 %3262, %v1415_v31  }
  0x8c   : > { %1440 = vperm.xlu0 %3261, %v1398_v34  }
  0x8d   : > { %1445 = vperm.xlu1 %3262, %v1399_v33  }
  0x90   : > { %1510 = vperm.xlu0 %3261, %v1412_v36  }
  0x91   : > { %1515 = vperm.xlu1 %3262, %v1413_v35  }
  0x93   : > { %v3914_v39 = vpop.permute.xlu0 %1276  ;;  %v3916_v40 = vpop.permute.xlu1 %1196 }
  0x94   : > { %1430 = vperm.xlu0 %3261, %v1396_v38  }
  0x95   : > { %1435 = vperm.xlu1 %3262, %v1397_v37  }
  0x97   : > { %v3924_v43 = vpop.permute.xlu0 %1281  ;;  %v3926_v44 = vpop.permute.xlu1 %1201 }
  0x98   : > { %2173 = vperm.xlu0 %3261, %v2019_v42  }
  0x99   : > { %2178 = vperm.xlu1 %3262, %v2020_v41  }
  0x9b   : > { %v3934_v47 = vpop.permute.xlu0 %1266 }
  0x9c   : > { %2093 = vperm.xlu0 %3261, %v2003_v46   ;;  %v3936_v48 = vpop.permute.xlu1 %1271 }
  0x9d   : > { %2098 = vperm.xlu1 %3262, %v2004_v45  }
  0x9f   : > { %v3944_v51 = vpop.permute.xlu0 %1186 }
  0xa0   : > { %2163 = vperm.xlu0 %3261, %v2017_v50   ;;  %v3952_v54 = vpop.permute.xlu1 %1191 }
  0xa1   : > { %2168 = vperm.xlu1 %3262, %v2018_v49  }
  0xa3   : > { %v3960_v57 = vpop.permute.xlu0 %1256 }
  0xa4   : > { %2083 = vperm.xlu0 %3261, %v2001_v53   ;;  %v3962_v58 = vpop.permute.xlu1 %1261 }
  0xa5   : > { %2088 = vperm.xlu1 %3262, %v2002_v52  }
  0xa7   : > { %v3970_v61 = vpop.permute.xlu0 %1176 }
  0xa8   : > { %2153 = vperm.xlu0 %3261, %v2015_v56   ;;  %v3978_v0 = vpop.permute.xlu1 %1181 }
  0xa9   : > { %2158 = vperm.xlu1 %3262, %v2016_v55  }
  0xab   : > { %v3986_v3 = vpop.permute.xlu0 %1246 }
  0xac   : > { %2073 = vperm.xlu0 %3261, %v1999_v60   ;;  %v3988_v4 = vpop.permute.xlu1 %1251 }
  0xad   : > { %2078 = vperm.xlu1 %3262, %v2000_v59  }
  0xaf   : > { %v3996_v7 = vpop.permute.xlu0 %1166 }
  0xb0   : > { %2143 = vperm.xlu0 %3261, %v2013_v63   ;;  %4633 = vst [vmem:[#allocation9_spill] sm:$0xff] %v3996_v7  ;;  %v4004_v10 = vpop.permute.xlu1 %1171 }
  0xb1   : > { %2148 = vperm.xlu1 %3262, %v2014_v62  }
  0xb3   : > { %v4012_v13 = vpop.permute.xlu0 %1236 }
  0xb4   : > { %2063 = vperm.xlu0 %3261, %v1997_v2   ;;  %4634 = vst [vmem:[#allocation10_spill] sm:$0xff] %v4012_v13  ;;  %v4014_v14 = vpop.permute.xlu1 %1241 }
  0xb5   : > { %2068 = vperm.xlu1 %3262, %v1998_v1  }
  0xb7   : > { %v4022_v17 = vpop.permute.xlu0 %1156 }
  0xb8   : > { %2133 = vperm.xlu0 %3261, %v2011_v6   ;;  %v4033_v21 = vpop.permute.xlu1 %1161 }
  0xb9   : > { %2138 = vperm.xlu1 %3262, %v2012_v5  }
  0xbb   : > { %v4041_v24 = vpop.permute.xlu0 %1226 }
  0xbc   : > { %2053 = vperm.xlu0 %3261, %v1995_v9   ;;  %4635 = vst [vmem:[#allocation11_spill] sm:$0xff] %v4041_v24  ;;  %v4043_v25 = vpop.permute.xlu1 %1231 }
  0xbd   : > { %2058 = vperm.xlu1 %3262, %v1996_v8   ;;  %4636 = vst [vmem:[#allocation12_spill] sm:$0xff] %v4043_v25 }
  0xbf   : > { %v1147_v28 = vpop.permute.xlu0 %1146 }
  0xc0   : > { %2123 = vperm.xlu0 %3261, %v2009_v12   ;;  %v1152_v31 = vpop.permute.xlu1 %1151 }
  0xc1   : > { %2128 = vperm.xlu1 %3262, %v2010_v11  }
  0xc3   : > { %v4060_v33 = vpop.permute.xlu0 %1216 }
  0xc4   : > { %2043 = vperm.xlu0 %3261, %v1993_v16   ;;  %4637 = vst [vmem:[#allocation13_spill] sm:$0xff] %v4060_v33  ;;  %v4062_v34 = vpop.permute.xlu1 %1221 }
  0xc5   : > { %2048 = vperm.xlu1 %3262, %v1994_v15   ;;  %4638 = vst [vmem:[#allocation14_spill] sm:$0xff] %v4062_v34 }
  0xc7   : > { %v1137_v35 = vpop.permute.xlu0 %1136 }
  0xc8   : > { %2113 = vperm.xlu0 %3261, %v2007_v19   ;;  %v1142_v36 = vpop.permute.xlu1 %1141 }
  0xc9   : > { %2118 = vperm.xlu1 %3262, %v2008_v18  }
  0xcb   : > { %v4064_v37 = vpop.permute.xlu0 %1206 }
  0xcc   : > { %2033 = vperm.xlu0 %3261, %v1991_v23   ;;  %4639 = vst [vmem:[#allocation15_spill] sm:$0xff] %v4064_v37  ;;  %v4066_v42 = vpop.permute.xlu1 %1211 }
  0xcd   : > { %2038 = vperm.xlu1 %3262, %v1992_v22   ;;  %4640 = vst [vmem:[#allocation16_spill] sm:$0xff] %v4066_v42 }
  0xcf   : > { %v1127_v55 = vpop.permute.xlu0 %1126 }
  0xd0   : > { %2103 = vperm.xlu0 %3261, %v2005_v27   ;;  %v1132_v63 = vpop.permute.xlu1 %1131 }
  0xd1   : > { %2108 = vperm.xlu1 %3262, %v2006_v26  }
  0xd4   : > { %2023 = vperm.xlu0 %3261, %v1989_v30  }
  0xd5   : > { %2028 = vperm.xlu1 %3262, %v1990_v29  }
  0xd8   : > { %2554 = vperm.xlu0 %3261, %v2551_v32  }
  0xe4   : > { %v3140_v38 = vpop.f32.mrf.mxu0 }
  0xe5   : > { %v3174_v41 = vpop.f32.mrf.mxu1 }
  0xe6   : > { %v974_v45 = vadd.f32 %v3174_v41, %v3140_v38  ;;  %v675_v46 = vpop.f32.mrf.mxu0 }
  0xe7   : > { %v965_v49 = vpop.f32.mrf.mxu1 }
  0xe8   : > { %v966_v50 = vadd.f32 %v965_v49, %v675_v46  ;;  %v3141_v52 = vpop.f32.mrf.mxu0  ;;  %v1286_v56 = vadd.f32 %v1137_v35, %v974_v45 }
  0xe9   : > { %v3175_v53 = vpop.f32.mrf.mxu1 }
  0xea   : > { %v977_v59 = vadd.f32 %v3175_v53, %v3141_v52  ;;  %v678_v60 = vpop.f32.mrf.mxu0  ;;  %v1284_v1 = vadd.f32 %v1127_v55, %v966_v50  ;;  %v1318_v9 = vmax.f32 %v1286_v56, 0.0 }
  0xeb   : > { %v968_v62 = vpop.f32.mrf.mxu1 }
  0xec   : > { %v1287_v2 = vadd.f32 %v1142_v36, %v977_v59  ;;  %v969_v5 = vadd.f32 %v968_v62, %v678_v60  ;;  %v3144_v6 = vpop.f32.mrf.mxu0  ;;  %v1316_v19 = vmax.f32 %v1284_v1, 0.0 }
  0xed   : > { %v3178_v8 = vpop.f32.mrf.mxu1 }
  0xee   : > { %v1319_v11 = vmax.f32 %v1287_v2, 0.0  ;;  %v1285_v12 = vadd.f32 %v1132_v63, %v969_v5  ;;  %v990_v15 = vadd.f32 %v3178_v8, %v3144_v6  ;;  %v691_v16 = vpop.f32.mrf.mxu0 }
  0xef   : > { %v981_v18 = vpop.f32.mrf.mxu1 }
  0xf0   : > { %v4068_v20 = vpack.c.bf16 %v1319_v11, %v1318_v9  ;;  %v1317_v22 = vmax.f32 %v1285_v12, 0.0  ;;  %v982_v23 = vadd.f32 %v981_v18, %v691_v16  ;;  %v3145_v26 = vpop.f32.mrf.mxu0  ;;  %v1290_v30 = vadd.f32 %v4022_v17, %v990_v15 }
  0xf1   : > { %v3179_v27 = vpop.f32.mrf.mxu1 }
  0xf2   : > { %4641 = vst [vmem:[#allocation17_spill] sm:$0xff] %v4068_v20  ;;  %v4070_v29 = vpack.c.bf16 %v1317_v22, %v1316_v19  ;;  %v993_v32 = vadd.f32 %v3179_v27, %v3145_v26  ;;  %v694_v35 = vpop.f32.mrf.mxu0  ;;  %v1288_v38 = vadd.f32 %v1147_v28, %v982_v23  ;;  %v1322_v50 = vmax.f32 %v1290_v30, 0.0 }
  0xf3   : > { %v984_v36 = vpop.f32.mrf.mxu1 }
  0xf4   : > { %4642 = vst [vmem:[#allocation18_spill] sm:$0xff] %v4070_v29  ;;  %v1291_v41 = vadd.f32 %v4033_v21, %v993_v32  ;;  %v985_v45 = vadd.f32 %v984_v36, %v694_v35  ;;  %v4074_v46 = vpop.f32.mrf.mxu0  ;;  %v1320_v59 = vmax.f32 %v1288_v38, 0.0 }
  0xf5   : > { %v4076_v49 = vpop.f32.mrf.mxu1 }
  0xf6   : > { %v1323_v52 = vmax.f32 %v1291_v41, 0.0  ;;  %v1289_v53 = vadd.f32 %v1152_v31, %v985_v45  ;;  %v4078_v55 = vpop.f32.mrf.mxu0 }
  0xf7   : > { %v4080_v56 = vpop.f32.mrf.mxu1 }
  0xf8   : > { %v4082_v17 = vpack.c.bf16 %v1323_v52, %v1322_v50  ;;  %v1321_v60 = vmax.f32 %v1289_v53, 0.0  ;;  %v3149_v62 = vpop.f32.mrf.mxu0 }
  0xf9   : > { %v3183_v28 = vpop.f32.mrf.mxu1 }
  0xfa   : > { %4643 = vst [vmem:[#allocation19_spill] sm:$0xff] %v4082_v17  ;;  %v4084_v63 = vpack.c.bf16 %v1321_v60, %v1320_v59  ;;  %v4086_v21 = vpop.f32.mrf.mxu0 }
  0xfb   : > { %v4088_v1 = vpop.f32.mrf.mxu1 }
  0xfc   : > { %4644 = vst [vmem:[#allocation20_spill] sm:$0xff] %v4084_v63  ;;  %v3152_v2 = vpop.f32.mrf.mxu0 }
  0xfd   : > { %v3186_v5 = vpop.f32.mrf.mxu1 }
  0xfe   : > { %v723_v6 = vpop.f32.mrf.mxu0  ;;  %v1022_v33 = vadd.f32 %v3186_v5, %v3152_v2 }
  0xff   : > { %v1013_v31 = vpop.f32.mrf.mxu1 }
 0x100   : > { %v3153_v8 = vpop.f32.mrf.mxu0  ;;  %v1014_v13 = vadd.f32 %v1013_v31, %v723_v6 }
 0x101   : > { %v3187_v9 = vpop.f32.mrf.mxu1 }
 0x102   : > { %v726_v11 = vpop.f32.mrf.mxu0  ;;  %v1025_v17 = vadd.f32 %v3187_v9, %v3153_v8 }
 0x103   : > { %v1016_v12 = vpop.f32.mrf.mxu1 }
 0x104   : > { %v4090_v15 = vpop.f32.mrf.mxu0  ;;  %v1299_v24 = vadd.f32 %v3926_v44, %v1025_v17 }
 0x105   : > { %4645 = vst [vmem:[#allocation21_spill] sm:$0xff] %v4090_v15  ;;  %v4092_v16 = vpop.f32.mrf.mxu1 }
 0x106   : > { %4646 = vst [vmem:[#allocation22_spill] sm:$0xff] %v4092_v16  ;;  %v4094_v18 = vpop.f32.mrf.mxu0  ;;  %v1017_v16 = vadd.f32 %v1016_v12, %v726_v11  ;;  %v1331_v44 = vmax.f32 %v1299_v24, 0.0 }
 0x107   : > { %4647 = vst [vmem:[#allocation23_spill] sm:$0xff] %v4094_v18  ;;  %v4096_v19 = vpop.f32.mrf.mxu1 }
 0x108   : > { %4648 = vst [vmem:[#allocation24_spill] sm:$0xff] %v4096_v19  ;;  %v4098_v22 = vpop.f32.mrf.mxu0 }
 0x109   : > { %4649 = vst [vmem:[#allocation25_spill] sm:$0xff] %v4098_v22  ;;  %v4100_v23 = vpop.f32.mrf.mxu1 }
 0x10a   : > { %4650 = vst [vmem:[#allocation26_spill] sm:$0xff] %v4100_v23  ;;  %v4102_v26 = vpop.f32.mrf.mxu0 }
 0x10b   : > { %4651 = vst [vmem:[#allocation27_spill] sm:$0xff] %v4102_v26  ;;  %v4104_v27 = vpop.f32.mrf.mxu1 }
 0x10c   : > { %4652 = vst [vmem:[#allocation28_spill] sm:$0xff] %v4104_v27  ;;  %v4106_v30 = vpop.f32.mrf.mxu0 }
 0x10d   : > { %v4108_v32 = vpop.f32.mrf.mxu1 }
 0x10e   : > { %v4110_v35 = vpop.f32.mrf.mxu0 }
 0x10f   : > { %4653 = vst [vmem:[#allocation29_spill] sm:$0xff] %v4110_v35  ;;  %v4112_v36 = vpop.f32.mrf.mxu1  ;;  %v1298_v35 = vadd.f32 %v3916_v40, %v1022_v33  ;;  %v1006_v33 = vadd.f32 %v4076_v49, %v4074_v46 }
 0x110   : > { %4654 = vst [vmem:[#allocation30_spill] sm:$0xff] %v4112_v36  ;;  %v3161_v38 = vpop.f32.mrf.mxu0 }
 0x111   : > { %v3195_v41 = vpop.f32.mrf.mxu1  ;;  %v1330_v6 = vmax.f32 %v1298_v35, 0.0  ;;  %v4659_v35 = vld [vmem:[#allocation25_spill] sm:$0xff] }
 0x112   : > { %v4114_v45 = vpop.f32.mrf.mxu0 }
 0x113   : > { %v4116_v50 = vpop.f32.mrf.mxu1 }
 0x114   : > { %v3164_v52 = vpop.f32.mrf.mxu0 }
 0x115   : > { %v3198_v53 = vpop.f32.mrf.mxu1 }
 0x116   : > { %v771_v59 = vpop.f32.mrf.mxu0  ;;  %v1070_v8 = vadd.f32 %v3198_v53, %v3164_v52  ;;  %v4662_v53 = vld [vmem:[#allocation21_spill] sm:$0xff] }
 0x117   : > { %v1061_v60 = vpop.f32.mrf.mxu1 }
 0x118   : > { %v3165_v29 = vpop.f32.mrf.mxu0 }
 0x119   : > { %v3199_v20 = vpop.f32.mrf.mxu1 }
 0x11a   : > { %v774_v63 = vpop.f32.mrf.mxu0  ;;  %v1073_v15 = vadd.f32 %v3199_v20, %v3165_v29  ;;  %v1297_v20 = vadd.f32 %v3952_v54, %v1017_v16  ;;  %v4655_v16 = vld [vmem:[#allocation9_spill] sm:$0xff] }
 0x11b   : > { %v1064_v37 = vpop.f32.mrf.mxu1 }
 0x11c   : > { %v3168_v42 = vpop.f32.mrf.mxu0  ;;  %v1311_v29 = vadd.f32 %v3962_v58, %v1073_v15  ;;  %v1065_v17 = vadd.f32 %v1064_v37, %v774_v63  ;;  %v1001_v58 = vadd.f32 %v4088_v1, %v4086_v21  ;;  %v1387_v37 = vpack.c.bf16 %v1331_v44, %v1330_v6  ;;  %v4666_v44 = vld [vmem:[#allocation27_spill] sm:$0xff]  ;;  %v4670_v6 = vld [vmem:[#allocation24_spill] sm:$0xff] }
 0x11d   : > { %v3202_v19 = vpop.f32.mrf.mxu1 }
 0x11e   : > { %v1086_v18 = vadd.f32 %v3202_v19, %v3168_v42  ;;  %v787_v27 = vpop.f32.mrf.mxu0  ;;  %v1009_v19 = vadd.f32 %v3183_v28, %v3149_v62  ;;  %v1329_v28 = vmax.f32 %v1297_v20, 0.0  ;;  %v1343_v63 = vmax.f32 %v1311_v29, 0.0  ;;  %v4667_v20 = vld [vmem:[#allocation28_spill] sm:$0xff] }
 0x11f   : > { %v1077_v26 = vpop.f32.mrf.mxu1  ;;  %v1309_v46 = vadd.f32 %v3988_v4, %v1065_v17  ;;  %v1293_v11 = vadd.f32 %v4004_v10, %v1001_v58  ;;  %v1033_v29 = vadd.f32 %v4667_v20, %v4666_v44 }
 0x120   : > { %v1078_v34 = vadd.f32 %v1077_v26, %v787_v27  ;;  %v3169_v25 = vpop.f32.mrf.mxu0  ;;  %v1314_v22 = vadd.f32 %v3914_v39, %v1086_v18  ;;  %v1295_v54 = vadd.f32 %v3978_v0, %v1009_v19  ;;  %v1054_v0 = vadd.f32 %v4108_v32, %v4106_v30  ;;  %v4657_v26 = vld [vmem:[#allocation29_spill] sm:$0xff] }
 0x121   : > { %v3203_v23 = vpop.f32.mrf.mxu1  ;;  %v1341_v15 = vmax.f32 %v1309_v46, 0.0  ;;  %v1325_v32 = vmax.f32 %v1293_v11, 0.0  ;;  %v4674_v46 = vld [vmem:[#allocation20_spill] sm:$0xff] }
 0x122   : > { %v1089_v36 = vadd.f32 %v3203_v23, %v3169_v25  ;;  %v790_v9 = vpop.f32.mrf.mxu0  ;;  %v1312_v42 = vadd.f32 %v3934_v47, %v1078_v34  ;;  %v1346_v39 = vmax.f32 %v1314_v22, 0.0  ;;  %v1296_v47 = vadd.f32 %v3944_v51, %v1014_v13  ;;  %v4656_v22 = vld [vmem:[#allocation10_spill] sm:$0xff]  ;;  %v3303_v11 = vld [vmem:[%s4617_s5 + $0x20] ss:$8 sps:$4 sm:$0xff]  }
 0x123   : > { %v1080_v7 = vpop.f32.mrf.mxu1  ;;  %v1294_v51 = vadd.f32 %v3970_v61, %v1006_v33  ;;  %v1327_v1 = vmax.f32 %v1295_v54, 0.0  ;;  %v1049_v61 = vadd.f32 %v4116_v50, %v4114_v45  ;;  %v1306_v23 = vadd.f32 %v4656_v22, %v1054_v0  ;;  %v4669_v33 = vld [vmem:[#allocation23_spill] sm:$0xff]  ;;  %v4676_v0 = vld [vmem:[#allocation18_spill] sm:$0xff] }
 0x124   : > { %v1315_v2 = vadd.f32 %v3924_v43, %v1089_v36  ;;  %v1081_v5 = vadd.f32 %v1080_v7, %v790_v9  ;;  %v1310_v43 = vadd.f32 %v3960_v57, %v1070_v8  ;;  %v1062_v7 = vadd.f32 %v1061_v60, %v771_v59  ;;  %v4663_v59 = vld [vmem:[#allocation22_spill] sm:$0xff]  ;;  %v4664_v9 = vld [vmem:[#allocation11_spill] sm:$0xff] }
 0x125   : > { %v1344_v34 = vmax.f32 %v1312_v42, 0.0  ;;  %v998_v57 = vadd.f32 %v4080_v56, %v4078_v55  ;;  %v1328_v13 = vmax.f32 %v1296_v47, 0.0  ;;  %v1326_v56 = vmax.f32 %v1294_v51, 0.0  ;;  %v4672_v54 = vld [vmem:[#allocation19_spill] sm:$0xff] }
 0x126   : > { %v1347_v25 = vmax.f32 %v1315_v2, 0.0  ;;  %v1313_v40 = vadd.f32 %v3936_v48, %v1081_v5  ;;  %v1057_v48 = vadd.f32 %v3195_v41, %v3161_v38  ;;  %v1342_v31 = vmax.f32 %v1310_v43, 0.0  ;;  %v4661_v41 = vld [vmem:[#allocation12_spill] sm:$0xff]  ;;  %v4665_v5 = vld [vmem:[#allocation14_spill] sm:$0xff] }
 0x127   : > { %v1308_v21 = vadd.f32 %v3986_v3, %v1062_v7  ;;  %v1386_v4 = vpack.c.bf16 %v1329_v28, %v1328_v13  ;;  %v1292_v18 = vadd.f32 %v4655_v16, %v998_v57  ;;  %v4658_v3 = vld [vmem:[#allocation30_spill] sm:$0xff]  ;;  %v1385_v10 = vpack.c.bf16 %v1327_v1, %v1326_v56  ;;  %v4675_v57 = vld [vmem:[#allocation17_spill] sm:$0xff] }
 0x128   : > { %v1345_v24 = vmax.f32 %v1313_v40, 0.0  ;;  %v1395_v62 = vpack.c.bf16 %v1347_v25, %v1346_v39  ;;  %v1307_v12 = vadd.f32 %v4014_v14, %v1057_v48  ;;  %v1393_v55 = vpack.c.bf16 %v1343_v63, %v1342_v31  ;;  %v4660_v14 = vld [vmem:[#allocation26_spill] sm:$0xff]  ;;  %v4668_v25 = vld [vmem:[#allocation13_spill] sm:$0xff] }
 0x129   : > { %v1046_v27 = vadd.f32 %v4658_v3, %v4657_v26  ;;  %v1340_v30 = vmax.f32 %v1308_v21, 0.0  ;;  %v1041_v36 = vadd.f32 %v4660_v14, %v4659_v35  ;;  %v1305_v45 = vadd.f32 %v4661_v41, %v1049_v61  ;;  %v3295_v13 = vld [vmem:[%s4617_s5] ss:$8 sps:$4 sm:$0xff]   ;;  %v3298_v31 = vld [vmem:[%s4617_s5 + $0x14] ss:$8 sps:$4 sm:$0xff]  }
 0x12a   : > { %2890 = vmatprep.subr.bf16.mxu0 %v1395_v62  ;;  %v1394_v49 = vpack.c.bf16 %v1345_v24, %v1344_v34  ;;  %v1339_v38 = vmax.f32 %v1307_v12, 0.0  ;;  %v1324_v52 = vmax.f32 %v1292_v18, 0.0  ;;  %v1038_v60 = vadd.f32 %v4663_v59, %v4662_v53  ;;  %v4671_v34 = vld [vmem:[#allocation16_spill] sm:$0xff]  ;;  %v3300_v21 = vld [vmem:[%s4617_s5 + $0x10] ss:$8 sps:$4 sm:$0xff]  }
 0x12b   : > { %2891 = vmatpush3.bf16.msra.mxu0 %v1387_v37  ;;  %v1392_v50 = vpack.c.bf16 %v1341_v15, %v1340_v30  ;;  %v1338_v8 = vmax.f32 %v1306_v23, 0.0  ;;  %v1304_v42 = vadd.f32 %v4664_v9, %v1046_v27  ;;  %v1303_v19 = vadd.f32 %v4665_v5, %v1041_v36  ;;  %v4673_v37 = vld [vmem:[#allocation15_spill] sm:$0xff]  ;;  %v3301_v1 = vld [vmem:[%s4617_s5 + $0x24] ss:$8 sps:$4 sm:$0xff]   ;;  %v3309_v15 = vld [vmem:[%s4617_s5 + $0x40] ss:$8 sps:$4 sm:$0xff]  }
 0x12c   : > { %2892 = vmatprep.subr.bf16.mxu0 %v1394_v49  ;;  %v1384_v2 = vpack.c.bf16 %v1325_v32, %v1324_v52  ;;  %v1337_v17 = vmax.f32 %v1305_v45, 0.0  ;;  %v1302_v40 = vadd.f32 %v4668_v25, %v1038_v60  ;;  %v1030_v47 = vadd.f32 %v4670_v6, %v4669_v33  ;;  %v3306_v12 = vld [vmem:[%s4617_s5 + $0x30] ss:$8 sps:$4 sm:$0xff]   ;;  %v3307_v61 = vld [vmem:[%s4617_s5 + $0x44] ss:$8 sps:$4 sm:$0xff]   ;;  %v4250_v52 = vpop.permute.xlu0 %1580  ;;  %v4258_v60 = vpop.permute.xlu1 %1585 }
 0x12d   : > { %v1391_v39 = vpack.c.bf16 %v1339_v38, %v1338_v8  ;;  %v1336_v43 = vmax.f32 %v1304_v42, 0.0  ;;  %v1335_v7 = vmax.f32 %v1303_v19, 0.0  ;;  %v1301_v24 = vadd.f32 %v4671_v34, %v1033_v29  ;;  %v3312_v56 = vld [vmem:[%s4617_s5 + $0x50] ss:$8 sps:$4 sm:$0xff]   ;;  %v3313_v16 = vld [vmem:[%s4617_s5 + $0x64] ss:$8 sps:$4 sm:$0xff]  }
 0x12e   : > { %v1334_v58 = vmax.f32 %v1302_v40, 0.0  ;;  %v1300_v28 = vadd.f32 %v4673_v37, %v1030_v47  ;;  %v3315_v18 = vld [vmem:[%s4617_s5 + $0x60] ss:$8 sps:$4 sm:$0xff]   ;;  %v3316_v22 = vld [vmem:[%s4617_s5 + $0x74] ss:$8 sps:$4 sm:$0xff]  }
 0x12f   : > { %2893 = vmatpush3.bf16.msra.mxu0 %v1386_v4  ;;  %v1390_v62 = vpack.c.bf16 %v1337_v17, %v1336_v43  ;;  %v1333_v48 = vmax.f32 %v1301_v24, 0.0  ;;  %v3304_v4 = vld [vmem:[%s4617_s5 + $0x34] ss:$8 sps:$4 sm:$0xff]   ;;  %v3318_v23 = vld [vmem:[%s4617_s5 + $0x70] ss:$8 sps:$4 sm:$0xff]  }
 0x130   : > { %2894 = vmatprep.subr.bf16.mxu0 %v1393_v55  ;;  %v1389_v63 = vpack.c.bf16 %v1335_v7, %v1334_v58  ;;  %v1332_v49 = vmax.f32 %v1300_v28, 0.0  ;;  %v3310_v55 = vld [vmem:[%s4617_s5 + $0x54] ss:$8 sps:$4 sm:$0xff]   ;;  %v3319_v26 = vld [vmem:[%s4617_s5 + $0x84] ss:$8 sps:$4 sm:$0xff]   ;;  %v4260_v8 = vpop.permute.xlu0 %1500  ;;  %v4262_v9 = vpop.permute.xlu1 %1505 }
 0x131   : > { %v3321_v3 = vld [vmem:[%s4617_s5 + $0x80] ss:$8 sps:$4 sm:$0xff]   ;;  %v3322_v27 = vld [vmem:[%s4617_s5 + $0x94] ss:$8 sps:$4 sm:$0xff]   ;;  %v3324_v30 = vld [vmem:[%s4617_s5 + $0x90] ss:$8 sps:$4 sm:$0xff]  }
 0x132   : > { %v1388_v51 = vpack.c.bf16 %v1333_v48, %v1332_v49  ;;  %v3327_v32 = vld [vmem:[%s4617_s5 + $0xa0] ss:$8 sps:$4 sm:$0xff]   ;;  %v3328_v35 = vld [vmem:[%s4617_s5 + $0xb4] ss:$8 sps:$4 sm:$0xff]   ;;  %v3330_v14 = vld [vmem:[%s4617_s5 + $0xb0] ss:$8 sps:$4 sm:$0xff]  }
 0x133   : > { %2895 = vmatpush3.bf16.msra.mxu0 %v1385_v10  ;;  %v3325_v10 = vld [vmem:[%s4617_s5 + $0xa4] ss:$8 sps:$4 sm:$0xff]   ;;  %v3333_v38 = vld [vmem:[%s4617_s5 + $0xc0] ss:$8 sps:$4 sm:$0xff]   ;;  %v3334_v41 = vld [vmem:[%s4617_s5 + $0xd4] ss:$8 sps:$4 sm:$0xff]  }
 0x134   : > { %2896 = vmatprep.subr.bf16.mxu0 %v1392_v50  ;;  %v3331_v36 = vld [vmem:[%s4617_s5 + $0xc4] ss:$8 sps:$4 sm:$0xff]   ;;  %v3336_v45 = vld [vmem:[%s4617_s5 + $0xd0] ss:$8 sps:$4 sm:$0xff]   ;;  %v3339_v53 = vld [vmem:[%s4617_s5 + $0xe0] ss:$8 sps:$4 sm:$0xff]   ;;  %v4269_v5 = vpop.permute.xlu1 %1575 }
 0x135   : > { %v3337_v50 = vld [vmem:[%s4617_s5 + $0xe4] ss:$8 sps:$4 sm:$0xff]   ;;  %v3340_v59 = vld [vmem:[%s4617_s5 + $0xf4] ss:$8 sps:$4 sm:$0xff]   ;;  %v3342_v42 = vld [vmem:[%s4617_s5 + $0xf0] ss:$8 sps:$4 sm:$0xff]  }
 0x137   : > { %2897 = vmatpush3.bf16.msra.mxu0 %v1384_v2  ;;  %v4267_v2 = vpop.permute.xlu0 %1570 }
 0x138   : > { %2898 = vmatprep.subr.bf16.mxu0 %v1391_v39  ;;  %v4273_v44 = vpop.permute.xlu1 %1495 }
 0x13b   : > { %2899 = vmatpush3.bf16.msra.mxu0 %v4672_v54  ;;  %v4271_v19 = vpop.permute.xlu0 %1490 }
 0x13c   : > { %2900 = vmatprep.subr.bf16.mxu0 %v1390_v62  ;;  %v4277_v29 = vpop.permute.xlu1 %1565 }
 0x13f   : > { %2901 = vmatpush3.bf16.msra.mxu0 %v4674_v46  ;;  %v4275_v20 = vpop.permute.xlu0 %1560 }
 0x140   : > { %2902 = vmatprep.subr.bf16.mxu0 %v1389_v63  ;;  %v4281_v39 = vpop.permute.xlu1 %1485 }
 0x143   : > { %2903 = vmatpush3.bf16.msra.mxu0 %v4675_v57  ;;  %v4279_v17 = vpop.permute.xlu0 %1480 }
 0x144   : > { %2904 = vmatprep.subr.bf16.mxu0 %v1388_v51  ;;  %v4285_v40 = vpop.permute.xlu1 %1555 }
 0x147   : > { %2905 = vmatpush3.bf16.msra.mxu0 %v4676_v0  ;;  %v4283_v25 = vpop.permute.xlu0 %1550 }
 0x148   : > { %v4289_v6 = vpop.permute.xlu1 %1475 }
 0x14a   : > { %1781 = vmatmul.mubr.bf16.vlgmr.msra.gmra.mxu0 %v3295_v13 }
 0x14b   : > { %1788 = vmatprep.mubr.bf16.mxu0 %v3298_v31  ;;  %v4287_v33 = vpop.permute.xlu0 %1470 }
 0x14c   : > { %v4293_v43 = vpop.permute.xlu1 %1545 }
 0x14f   : > { %v4291_v47 = vpop.permute.xlu0 %1540 }
 0x150   : > { %v1466_v34 = vpop.permute.xlu1 %1465 }
 0x152   : > { %1789 = vmatmul.mubr.bf16.gmra.mxu0 %v3300_v21 }
 0x153   : > { %1796 = vmatprep.mubr.bf16.mxu0 %v3301_v1  ;;  %v1461_v7 = vpop.permute.xlu0 %1460 }
 0x154   : > { %v4297_v62 = vpop.permute.xlu1 %1535 }
 0x157   : > { %v4295_v24 = vpop.permute.xlu0 %1530 }
 0x158   : > { %v1456_v58 = vpop.permute.xlu1 %1455 }
 0x15a   : > { %1797 = vmatmul.mubr.bf16.gmra.mxu0 %v3303_v11 }
 0x15b   : > { %1804 = vmatprep.mubr.bf16.mxu0 %v3304_v4  ;;  %v1451_v54 = vpop.permute.xlu0 %1450 }
 0x15c   : > { %v4301_v28 = vpop.permute.xlu1 %1525 }
 0x15f   : > { %v4299_v37 = vpop.permute.xlu0 %1520 }
 0x160   : > { %v1446_v63 = vpop.permute.xlu1 %1445 }
 0x162   : > { %1805 = vmatmul.mubr.bf16.gmra.mxu0 %v3306_v12 }
 0x163   : > { %1812 = vmatprep.mubr.bf16.mxu0 %v3307_v61  ;;  %v1441_v48 = vpop.permute.xlu0 %1440 }
 0x164   : > { %v4305_v51 = vpop.permute.xlu1 %1515 }
 0x167   : > { %v4303_v46 = vpop.permute.xlu0 %1510 }
 0x168   : > { %v1436_v4 = vpop.permute.xlu1 %1435 }
 0x16a   : > { %1813 = vmatmul.mubr.bf16.gmra.mxu0 %v3309_v15 }
 0x16b   : > { %1820 = vmatprep.mubr.bf16.mxu0 %v3310_v55  ;;  %v1431_v31 = vpop.permute.xlu0 %1430 }
 0x172   : > { %1821 = vmatmul.mubr.bf16.gmra.mxu0 %v3312_v56 }
 0x173   : > { %1828 = vmatprep.mubr.bf16.mxu0 %v3313_v16 }
 0x17a   : > { %1829 = vmatmul.mubr.bf16.gmra.mxu0 %v3315_v18 }
 0x17b   : > { %1836 = vmatprep.mubr.bf16.mxu0 %v3316_v22 }
 0x182   : > { %1837 = vmatmul.mubr.bf16.gmra.mxu0 %v3318_v23 }
 0x183   : > { %1844 = vmatprep.mubr.bf16.mxu0 %v3319_v26 }
 0x18a   : > { %1845 = vmatmul.mubr.bf16.gmra.mxu0 %v3321_v3 }
 0x18b   : > { %1852 = vmatprep.mubr.bf16.mxu0 %v3322_v27 }
 0x192   : > { %1853 = vmatmul.mubr.bf16.gmra.mxu0 %v3324_v30 }
 0x193   : > { %1860 = vmatprep.mubr.bf16.mxu0 %v3325_v10 }
 0x19a   : > { %1861 = vmatmul.mubr.bf16.gmra.mxu0 %v3327_v32 }
 0x19b   : > { %1868 = vmatprep.mubr.bf16.mxu0 %v3328_v35 }
 0x1a2   : > { %1869 = vmatmul.mubr.bf16.gmra.mxu0 %v3330_v14 }
 0x1a3   : > { %1876 = vmatprep.mubr.bf16.mxu0 %v3331_v36 }
 0x1aa   : > { %1877 = vmatmul.mubr.bf16.gmra.mxu0 %v3333_v38 }
 0x1ab   : > { %1884 = vmatprep.mubr.bf16.mxu0 %v3334_v41 }
 0x1b2   : > { %1885 = vmatmul.mubr.bf16.gmra.mxu0 %v3336_v45 }
 0x1b3   : > { %1892 = vmatprep.mubr.bf16.mxu0 %v3337_v50 }
 0x1ba   : > { %1893 = vmatmul.mubr.bf16.gmra.mxu0 %v3339_v53 }
 0x1bb   : > { %1900 = vmatprep.mubr.bf16.mxu0 %v3340_v59 }
 0x1c2   : > { %1901 = vmatmul.mubr.bf16.gmra.mxu0 %v3342_v42 }
 0x20a   : > { %v2906_v49 = vpop.f32.mrf.mxu0 }
 0x20c   : > { %v2907_v57 = vpop.f32.mrf.mxu0 }
 0x20d   : > { %v2908_v13 = vadd.f32 %v2907_v57, %v2906_v49 }
 0x20e   : > { %v2909_v0 = vpop.f32.mrf.mxu0 }
 0x20f   : > { %v1783_v1 = vadd.f32 %v2908_v13, %v1431_v31 }
 0x210   : > { %v2910_v21 = vpop.f32.mrf.mxu0 }
 0x211   : > { %v2911_v11 = vadd.f32 %v2910_v21, %v2909_v0  ;;  %v1909_v55 = vmax.f32 %v1783_v1, 0.0 }
 0x212   : > { %v2912_v12 = vpop.f32.mrf.mxu0 }
 0x213   : > { %v1786_v61 = vadd.f32 %v2911_v11, %v1436_v4 }
 0x214   : > { %v2913_v15 = vpop.f32.mrf.mxu0 }
 0x215   : > { %v1910_v56 = vmax.f32 %v1786_v61, 0.0  ;;  %v2914_v16 = vadd.f32 %v2913_v15, %v2912_v12 }
 0x216   : > { %v2915_v18 = vpop.f32.mrf.mxu0 }
 0x217   : > { %v4307_v22 = vpack.c.bf16 %v1910_v56, %v1909_v55  ;;  %v1791_v26 = vadd.f32 %v2914_v16, %v1441_v48 }
 0x218   : > { %v2916_v23 = vpop.f32.mrf.mxu0 }
 0x219   : > { %v2917_v3 = vadd.f32 %v2916_v23, %v2915_v18  ;;  %v1911_v32 = vmax.f32 %v1791_v26, 0.0 }
 0x21a   : > { %v2918_v27 = vpop.f32.mrf.mxu0 }
 0x21b   : > { %v1794_v30 = vadd.f32 %v2917_v3, %v1446_v63 }
 0x21c   : > { %v2919_v10 = vpop.f32.mrf.mxu0 }
 0x21d   : > { %v1912_v35 = vmax.f32 %v1794_v30, 0.0  ;;  %v2920_v14 = vadd.f32 %v2919_v10, %v2918_v27 }
 0x21e   : > { %v2921_v36 = vpop.f32.mrf.mxu0 }
 0x21f   : > { %v4309_v38 = vpack.c.bf16 %v1912_v35, %v1911_v32  ;;  %v1799_v45 = vadd.f32 %v2920_v14, %v1451_v54 }
 0x220   : > { %v2922_v41 = vpop.f32.mrf.mxu0 }
 0x221   : > { %v2923_v50 = vadd.f32 %v2922_v41, %v2921_v36  ;;  %v1913_v49 = vmax.f32 %v1799_v45, 0.0 }
 0x222   : > { %v2924_v53 = vpop.f32.mrf.mxu0 }
 0x223   : > { %v1802_v59 = vadd.f32 %v2923_v50, %v1456_v58  ;;  %v3345_v58 = vld [vmem:[%s4619_s7 + $0x4] ss:$8 sps:$4 sm:$0xff]  }
 0x224   : > { %v2925_v42 = vpop.f32.mrf.mxu0  ;;  %2373 = vmatprep.mubr.bf16.mxu1 %v3345_v58 }
 0x225   : > { %v1914_v57 = vmax.f32 %v1802_v59, 0.0  ;;  %v2926_v13 = vadd.f32 %v2925_v42, %v2924_v53 }
 0x226   : > { %v2927_v48 = vpop.f32.mrf.mxu0 }
 0x227   : > { %v4311_v0 = vpack.c.bf16 %v1914_v57, %v1913_v49  ;;  %v1807_v31 = vadd.f32 %v2926_v13, %v1461_v7 }
 0x228   : > { %v2928_v63 = vpop.f32.mrf.mxu0 }
 0x229   : > { %v2929_v21 = vadd.f32 %v2928_v63, %v2927_v48  ;;  %v1915_v12 = vmax.f32 %v1807_v31, 0.0 }
 0x22a   : > { %v2930_v1 = vpop.f32.mrf.mxu0 }
 0x22b   : > { %v1810_v11 = vadd.f32 %v2929_v21, %v1466_v34 }
 0x22c   : > { %v2931_v4 = vpop.f32.mrf.mxu0 }
 0x22d   : > { %v1916_v61 = vmax.f32 %v1810_v11, 0.0  ;;  %v2932_v15 = vadd.f32 %v2931_v4, %v2930_v1 }
 0x22e   : > { %v2933_v54 = vpop.f32.mrf.mxu0 }
 0x22f   : > { %v4316_v55 = vpack.c.bf16 %v1916_v61, %v1915_v12  ;;  %v1815_v16 = vadd.f32 %v2932_v15, %v4287_v33 }
 0x230   : > { %v2934_v56 = vpop.f32.mrf.mxu0 }
 0x231   : > { %v2935_v18 = vadd.f32 %v2934_v56, %v2933_v54  ;;  %v1917_v26 = vmax.f32 %v1815_v16, 0.0 }
 0x232   : > { %v2936_v7 = vpop.f32.mrf.mxu0 }
 0x233   : > { %v1818_v23 = vadd.f32 %v2935_v18, %v4289_v6 }
 0x234   : > { %v2937_v34 = vpop.f32.mrf.mxu0 }
 0x235   : > { %v1918_v3 = vmax.f32 %v1818_v23, 0.0  ;;  %v2938_v27 = vadd.f32 %v2937_v34, %v2936_v7 }
 0x236   : > { %v2939_v30 = vpop.f32.mrf.mxu0 }
 0x237   : > { %v4320_v10 = vpack.c.bf16 %v1918_v3, %v1917_v26  ;;  %v1823_v35 = vadd.f32 %v2938_v27, %v4279_v17 }
 0x238   : > { %v2940_v32 = vpop.f32.mrf.mxu0 }
 0x239   : > { %v2941_v14 = vadd.f32 %v2940_v32, %v2939_v30  ;;  %v1919_v33 = vmax.f32 %v1823_v35, 0.0 }
 0x23a   : > { %v2942_v36 = vpop.f32.mrf.mxu0 }
 0x23b   : > { %v1826_v41 = vadd.f32 %v2941_v14, %v4281_v39 }
 0x23c   : > { %v2943_v45 = vpop.f32.mrf.mxu0 }
 0x23d   : > { %v1920_v50 = vmax.f32 %v1826_v41, 0.0  ;;  %v2944_v53 = vadd.f32 %v2943_v45, %v2942_v36 }
 0x23e   : > { %v2945_v59 = vpop.f32.mrf.mxu0 }
 0x23f   : > { %v4324_v6 = vpack.c.bf16 %v1920_v50, %v1919_v33  ;;  %v1831_v49 = vadd.f32 %v2944_v53, %v4271_v19 }
 0x240   : > { %v2946_v42 = vpop.f32.mrf.mxu0 }
 0x241   : > { %v2947_v57 = vadd.f32 %v2946_v42, %v2945_v59  ;;  %v1921_v17 = vmax.f32 %v1831_v49, 0.0 }
 0x242   : > { %v2948_v13 = vpop.f32.mrf.mxu0 }
 0x243   : > { %v1834_v48 = vadd.f32 %v2947_v57, %v4273_v44 }
 0x244   : > { %v2949_v63 = vpop.f32.mrf.mxu0 }
 0x245   : > { %v1922_v31 = vmax.f32 %v1834_v48, 0.0  ;;  %v2950_v21 = vadd.f32 %v2949_v63, %v2948_v13 }
 0x246   : > { %v2951_v1 = vpop.f32.mrf.mxu0 }
 0x247   : > { %v4328_v39 = vpack.c.bf16 %v1922_v31, %v1921_v17  ;;  %v1839_v4 = vadd.f32 %v2950_v21, %v4260_v8 }
 0x248   : > { %v2952_v11 = vpop.f32.mrf.mxu0 }
 0x249   : > { %v2953_v12 = vadd.f32 %v2952_v11, %v2951_v1  ;;  %v1923_v19 = vmax.f32 %v1839_v4, 0.0 }
 0x24a   : > { %v2954_v61 = vpop.f32.mrf.mxu0 }
 0x24b   : > { %v1842_v15 = vadd.f32 %v2953_v12, %v4262_v9 }
 0x24c   : > { %v2955_v54 = vpop.f32.mrf.mxu0 }
 0x24d   : > { %v1924_v58 = vmax.f32 %v1842_v15, 0.0  ;;  %v2956_v56 = vadd.f32 %v2955_v54, %v2954_v61 }
 0x24e   : > { %v2957_v16 = vpop.f32.mrf.mxu0 }
 0x24f   : > { %v4332_v44 = vpack.c.bf16 %v1924_v58, %v1923_v19  ;;  %v1847_v7 = vadd.f32 %v2956_v56, %v4303_v46 }
 0x250   : > { %v2958_v18 = vpop.f32.mrf.mxu0 }
 0x251   : > { %v2959_v23 = vadd.f32 %v2958_v18, %v2957_v16  ;;  %v1925_v8 = vmax.f32 %v1847_v7, 0.0 }
 0x252   : > { %v2960_v34 = vpop.f32.mrf.mxu0 }
 0x253   : > { %v1850_v26 = vadd.f32 %v2959_v23, %v4305_v51 }
 0x254   : > { %v2961_v3 = vpop.f32.mrf.mxu0 }
 0x255   : > { %v1926_v27 = vmax.f32 %v1850_v26, 0.0  ;;  %v2962_v30 = vadd.f32 %v2961_v3, %v2960_v34 }
 0x256   : > { %v2963_v32 = vpop.f32.mrf.mxu0 }
 0x257   : > { %v4336_v9 = vpack.c.bf16 %v1926_v27, %v1925_v8  ;;  %v1855_v14 = vadd.f32 %v2962_v30, %v4299_v37 }
 0x258   : > { %v2964_v35 = vpop.f32.mrf.mxu0 }
 0x259   : > { %v2965_v36 = vadd.f32 %v2964_v35, %v2963_v32  ;;  %v1927_v46 = vmax.f32 %v1855_v14, 0.0 }
 0x25a   : > { %v2966_v41 = vpop.f32.mrf.mxu0 }
 0x25b   : > { %v1858_v45 = vadd.f32 %v2965_v36, %v4301_v28 }
 0x25c   : > { %v2967_v33 = vpop.f32.mrf.mxu0 }
 0x25d   : > { %v1928_v50 = vmax.f32 %v1858_v45, 0.0 }
 0x25e   : > { %v2969_v53 = vpop.f32.mrf.mxu0 }
 0x25f   : > { %v4340_v59 = vpack.c.bf16 %v1928_v50, %v1927_v46 }
 0x260   : > { %v2970_v51 = vpop.f32.mrf.mxu0 }
 0x262   : > { %v2972_v42 = vpop.f32.mrf.mxu0 }
 0x264   : > { %v2973_v49 = vpop.f32.mrf.mxu0 }
 0x266   : > { %v2975_v57 = vpop.f32.mrf.mxu0 }
 0x268   : > { %v2976_v13 = vpop.f32.mrf.mxu0 }
 0x26a   : > { %v2978_v48 = vpop.f32.mrf.mxu0 }
 0x26c   : > { %v2979_v63 = vpop.f32.mrf.mxu0 }
 0x26d   : > { %v2980_v45 = vadd.f32 %v2979_v63, %v2978_v48 }
 0x26e   : > { %v2981_v17 = vpop.f32.mrf.mxu0 }
 0x270   : > { %v2982_v31 = vpop.f32.mrf.mxu0 }
 0x271   : > { %v2983_v30 = vadd.f32 %v2982_v31, %v2981_v17  ;;  %v2971_v17 = vadd.f32 %v2970_v51, %v2969_v53 }
 0x272   : > { %v2984_v37 = vpop.f32.mrf.mxu0 }
 0x273   : > { %v1866_v31 = vadd.f32 %v2971_v17, %v4297_v62  ;;  %v3348_v62 = vld [vmem:[%s4619_s7 + $0x10] ss:$8 sps:$4 sm:$0xff]  }
 0x274   : > { %v2985_v21 = vpop.f32.mrf.mxu0 }
 0x275   : > { %v2986_v3 = vadd.f32 %v2985_v21, %v2984_v37  ;;  %v3364_v21 = vld [vmem:[%s4619_s7 + $0x74] ss:$8 sps:$4 sm:$0xff]  }
 0x276   : > { %v2987_v1 = vpop.f32.mrf.mxu0 }
 0x277   : > { %v1887_v46 = vadd.f32 %v2986_v3, %v4275_v20  ;;  %v3387_v3 = vld [vmem:[%s4619_s7 + $0xe0] ss:$8 sps:$4 sm:$0xff]  }
 0x278   : > { %v2988_v11 = vpop.f32.mrf.mxu0 }
 0x279   : > { %v2989_v7 = vadd.f32 %v2988_v11, %v2987_v1 }
 0x27a   : > { %v2990_v28 = vpop.f32.mrf.mxu0 }
 0x27b   : > { %v1890_v32 = vadd.f32 %v2989_v7, %v4277_v29  ;;  %v1935_v29 = vmax.f32 %v1887_v46, 0.0  ;;  %v3382_v7 = vld [vmem:[%s4619_s7 + $0xd4] ss:$8 sps:$4 sm:$0xff]  }
 0x27c   : > { %v2991_v4 = vpop.f32.mrf.mxu0 }
 0x27d   : > { %v2992_v16 = vadd.f32 %v2991_v4, %v2990_v28  ;;  %v1936_v11 = vmax.f32 %v1890_v32, 0.0  ;;  %v3366_v28 = vld [vmem:[%s4619_s7 + $0x70] ss:$8 sps:$4 sm:$0xff]   ;;  %v3367_v4 = vld [vmem:[%s4619_s7 + $0x84] ss:$8 sps:$4 sm:$0xff]  }
 0x27e   : > { %v2993_v12 = vpop.f32.mrf.mxu0 }
 0x27f   : > { %v1895_v8 = vadd.f32 %v2992_v16, %v4267_v2  ;;  %v1879_v2 = vadd.f32 %v2980_v45, %v4283_v25  ;;  %v1986_v20 = vpack.c.bf16 %v1936_v11, %v1935_v29  ;;  %v3379_v16 = vld [vmem:[%s4619_s7 + $0xc4] ss:$8 sps:$4 sm:$0xff]  }
 0x280   : > { %v2994_v61 = vpop.f32.mrf.mxu0 }
 0x281   : > { %v2995_v19 = vadd.f32 %v2994_v61, %v2993_v12  ;;  %v1937_v50 = vmax.f32 %v1895_v8, 0.0  ;;  %v3369_v12 = vld [vmem:[%s4619_s7 + $0x80] ss:$8 sps:$4 sm:$0xff]   ;;  %v3370_v61 = vld [vmem:[%s4619_s7 + $0x94] ss:$8 sps:$4 sm:$0xff]  }
 0x282   : > { %v2996_v15 = vpop.f32.mrf.mxu0  ;;  %v3388_v8 = vld [vmem:[%s4619_s7 + $0xf4] ss:$8 sps:$4 sm:$0xff]  }
 0x283   : > { %v1898_v23 = vadd.f32 %v2995_v19, %v4269_v5  ;;  %v2977_v5 = vadd.f32 %v2976_v13, %v2975_v57  ;;  %v2968_v57 = vadd.f32 %v2967_v33, %v2966_v41  ;;  %v1933_v13 = vmax.f32 %v1879_v2, 0.0  ;;  %v3360_v33 = vld [vmem:[%s4619_s7 + $0x50] ss:$8 sps:$4 sm:$0xff]   ;;  %v3375_v19 = vld [vmem:[%s4619_s7 + $0xa0] ss:$8 sps:$4 sm:$0xff]  }
 0x284   : > { %v2997_v54 = vpop.f32.mrf.mxu0 }
 0x285   : > { %v2998_v58 = vadd.f32 %v2997_v54, %v2996_v15  ;;  %v1938_v35 = vmax.f32 %v1898_v23, 0.0  ;;  %v1874_v48 = vadd.f32 %v2977_v5, %v4293_v43  ;;  %v1863_v25 = vadd.f32 %v2968_v57, %v4295_v24  ;;  %v3346_v24 = vld [vmem:[%s4619_s7 + $0x14] ss:$8 sps:$4 sm:$0xff]   ;;  %v3372_v15 = vld [vmem:[%s4619_s7 + $0x90] ss:$8 sps:$4 sm:$0xff]  }
 0x286   : > { %v2999_v56 = vpop.f32.mrf.mxu0  ;;  %v1930_v43 = vmax.f32 %v1866_v31, 0.0  ;;  %v3373_v54 = vld [vmem:[%s4619_s7 + $0xa4] ss:$8 sps:$4 sm:$0xff]   ;;  %v3384_v23 = vld [vmem:[%s4619_s7 + $0xd0] ss:$8 sps:$4 sm:$0xff]  }
 0x287   : > { %v1903_v34 = vadd.f32 %v2998_v58, %v4250_v52  ;;  %v1882_v52 = vadd.f32 %v2983_v30, %v4285_v40  ;;  %v1987_v37 = vpack.c.bf16 %v1938_v35, %v1937_v50  ;;  %v3376_v58 = vld [vmem:[%s4619_s7 + $0xb4] ss:$8 sps:$4 sm:$0xff]   ;;  %v3390_v35 = vld [vmem:[%s4619_s7 + $0xf0] ss:$8 sps:$4 sm:$0xff]  }
 0x288   : > { %v3000_v18 = vpop.f32.mrf.mxu0 }
 0x289   : > { %v3001_v26 = vadd.f32 %v3000_v18, %v2999_v56  ;;  %v1939_v14 = vmax.f32 %v1903_v34, 0.0  ;;  %v1934_v63 = vmax.f32 %v1882_v52, 0.0  ;;  %v3378_v56 = vld [vmem:[%s4619_s7 + $0xb0] ss:$8 sps:$4 sm:$0xff]   ;;  %v3381_v18 = vld [vmem:[%s4619_s7 + $0xc0] ss:$8 sps:$4 sm:$0xff]  }
 0x28a   : > { %v3385_v34 = vld [vmem:[%s4619_s7 + $0xe4] ss:$8 sps:$4 sm:$0xff]  }
 0x28b   : > { %v1906_v27 = vadd.f32 %v3001_v26, %v4258_v60  ;;  %v2974_v60 = vadd.f32 %v2973_v49, %v2972_v42  ;;  %v1985_v42 = vpack.c.bf16 %v1934_v63, %v1933_v13  ;;  %v3363_v49 = vld [vmem:[%s4619_s7 + $0x60] ss:$8 sps:$4 sm:$0xff]   ;;  %v4448_v26 = vpop.permute.xlu0 %2173 }
 0x28d   : > { %v1940_v36 = vmax.f32 %v1906_v27, 0.0  ;;  %v1871_v40 = vadd.f32 %v2974_v60, %v4291_v47  ;;  %v3343_v47 = vld [vmem:[%s4619_s7] ss:$8 sps:$4 sm:$0xff]   ;;  %v4456_v27 = vpop.permute.xlu1 %2178 }
 0x28f   : > { %v1988_v1 = vpack.c.bf16 %v1940_v36, %v1939_v14  ;;  %v1931_v53 = vmax.f32 %v1871_v40, 0.0  ;;  %v4458_v30 = vpop.permute.xlu0 %2093 }
 0x291   : > { %3002 = vmatprep.subr.bf16.mxu1 %v1988_v1  ;;  %v4460_v32 = vpop.permute.xlu1 %2098 }
 0x292   : > { %3003 = vmatpush3.bf16.msra.mxu1 %v4332_v44  ;;  %v1932_v44 = vmax.f32 %v1874_v48, 0.0 }
 0x293   : > { %3004 = vmatprep.subr.bf16.mxu1 %v1987_v37  ;;  %v4465_v14 = vpop.permute.xlu0 %2163 }
 0x294   : > { %v1984_v51 = vpack.c.bf16 %v1932_v44, %v1931_v53 }
 0x295   : > { %v4467_v36 = vpop.permute.xlu1 %2168 }
 0x296   : > { %3005 = vmatpush3.bf16.msra.mxu1 %v4328_v39  ;;  %v1929_v39 = vmax.f32 %v1863_v25, 0.0 }
 0x297   : > { %3006 = vmatprep.subr.bf16.mxu1 %v1986_v20  ;;  %v4469_v45 = vpop.permute.xlu0 %2083 }
 0x298   : > { %v1983_v41 = vpack.c.bf16 %v1930_v43, %v1929_v39 }
 0x299   : > { %v4471_v46 = vpop.permute.xlu1 %2088 }
 0x29a   : > { %3007 = vmatpush3.bf16.msra.mxu1 %v4324_v6  ;;  %v3357_v6 = vld [vmem:[%s4619_s7 + $0x40] ss:$8 sps:$4 sm:$0xff]  }
 0x29b   : > { %3008 = vmatprep.subr.bf16.mxu1 %v1985_v42  ;;  %v4473_v50 = vpop.permute.xlu0 %2153 }
 0x29d   : > { %v4475_v1 = vpop.permute.xlu1 %2158 }
 0x29e   : > { %3009 = vmatpush3.bf16.msra.mxu1 %v4320_v10  ;;  %v3355_v10 = vld [vmem:[%s4619_s7 + $0x44] ss:$8 sps:$4 sm:$0xff]  }
 0x29f   : > { %3010 = vmatprep.subr.bf16.mxu1 %v1984_v51  ;;  %v4477_v5 = vpop.permute.xlu0 %2073 }
 0x2a1   : > { %v4479_v52 = vpop.permute.xlu1 %2078 }
 0x2a2   : > { %3011 = vmatpush3.bf16.msra.mxu1 %v4316_v55  ;;  %v3354_v55 = vld [vmem:[%s4619_s7 + $0x30] ss:$8 sps:$4 sm:$0xff]  }
 0x2a3   : > { %3012 = vmatprep.subr.bf16.mxu1 %v1983_v41  ;;  %v4481_v11 = vpop.permute.xlu0 %2143 }
 0x2a5   : > { %v4483_v37 = vpop.permute.xlu1 %2148 }
 0x2a6   : > { %3013 = vmatpush3.bf16.msra.mxu1 %v4311_v0  ;;  %v3352_v0 = vld [vmem:[%s4619_s7 + $0x34] ss:$8 sps:$4 sm:$0xff]  }
 0x2a7   : > { %3014 = vmatprep.subr.bf16.mxu1 %v4340_v59  ;;  %v3361_v59 = vld [vmem:[%s4619_s7 + $0x64] ss:$8 sps:$4 sm:$0xff]   ;;  %v4485_v60 = vpop.permute.xlu0 %2063 }
 0x2a9   : > { %v4487_v2 = vpop.permute.xlu1 %2068 }
 0x2aa   : > { %3015 = vmatpush3.bf16.msra.mxu1 %v4309_v38  ;;  %v3349_v38 = vld [vmem:[%s4619_s7 + $0x24] ss:$8 sps:$4 sm:$0xff]  }
 0x2ab   : > { %3016 = vmatprep.subr.bf16.mxu1 %v4336_v9  ;;  %v3358_v9 = vld [vmem:[%s4619_s7 + $0x54] ss:$8 sps:$4 sm:$0xff]   ;;  %v4489_v29 = vpop.permute.xlu0 %2133 }
 0x2ad   : > { %v4491_v17 = vpop.permute.xlu1 %2138 }
 0x2ae   : > { %3017 = vmatpush3.bf16.msra.mxu1 %v4307_v22  ;;  %v3351_v22 = vld [vmem:[%s4619_s7 + $0x20] ss:$8 sps:$4 sm:$0xff]  }
 0x2af   : > { %v2054_v48 = vpop.permute.xlu0 %2053 }
 0x2b1   : > { %2374 = vmatmul.mubr.bf16.vlgmr.msra.gmra.mxu1 %v3343_v47  ;;  %v2059_v63 = vpop.permute.xlu1 %2058 }
 0x2b2   : > { %2381 = vmatprep.mubr.bf16.mxu1 %v3346_v24 }
 0x2b3   : > { %v4493_v20 = vpop.permute.xlu0 %2123 }
 0x2b5   : > { %v4495_v57 = vpop.permute.xlu1 %2128 }
 0x2b7   : > { %v2044_v40 = vpop.permute.xlu0 %2043 }
 0x2b9   : > { %2382 = vmatmul.mubr.bf16.gmra.mxu1 %v3348_v62  ;;  %v2049_v13 = vpop.permute.xlu1 %2048 }
 0x2ba   : > { %2389 = vmatprep.mubr.bf16.mxu1 %v3349_v38 }
 0x2bb   : > { %v4497_v31 = vpop.permute.xlu0 %2113 }
 0x2bd   : > { %v4499_v44 = vpop.permute.xlu1 %2118 }
 0x2bf   : > { %v2034_v42 = vpop.permute.xlu0 %2033 }
 0x2c1   : > { %2390 = vmatmul.mubr.bf16.gmra.mxu1 %v3351_v22  ;;  %v2039_v25 = vpop.permute.xlu1 %2038 }
 0x2c2   : > { %2397 = vmatprep.mubr.bf16.mxu1 %v3352_v0 }
 0x2c3   : > { %v4501_v53 = vpop.permute.xlu0 %2103 }
 0x2c5   : > { %v4503_v51 = vpop.permute.xlu1 %2108 }
 0x2c7   : > { %v2024_v24 = vpop.permute.xlu0 %2023 }
 0x2c9   : > { %2398 = vmatmul.mubr.bf16.gmra.mxu1 %v3354_v55  ;;  %v2029_v0 = vpop.permute.xlu1 %2028 }
 0x2ca   : > { %2405 = vmatprep.mubr.bf16.mxu1 %v3355_v10 }
 0x2d1   : > { %2406 = vmatmul.mubr.bf16.gmra.mxu1 %v3357_v6 }
 0x2d2   : > { %2413 = vmatprep.mubr.bf16.mxu1 %v3358_v9 }
 0x2d9   : > { %2414 = vmatmul.mubr.bf16.gmra.mxu1 %v3360_v33 }
 0x2da   : > { %2421 = vmatprep.mubr.bf16.mxu1 %v3361_v59 }
 0x2e1   : > { %2422 = vmatmul.mubr.bf16.gmra.mxu1 %v3363_v49 }
 0x2e2   : > { %2429 = vmatprep.mubr.bf16.mxu1 %v3364_v21 }
 0x2e9   : > { %2430 = vmatmul.mubr.bf16.gmra.mxu1 %v3366_v28 }
 0x2ea   : > { %2437 = vmatprep.mubr.bf16.mxu1 %v3367_v4 }
 0x2f1   : > { %2438 = vmatmul.mubr.bf16.gmra.mxu1 %v3369_v12 }
 0x2f2   : > { %2445 = vmatprep.mubr.bf16.mxu1 %v3370_v61 }
 0x2f9   : > { %2446 = vmatmul.mubr.bf16.gmra.mxu1 %v3372_v15 }
 0x2fa   : > { %2453 = vmatprep.mubr.bf16.mxu1 %v3373_v54 }
 0x301   : > { %2454 = vmatmul.mubr.bf16.gmra.mxu1 %v3375_v19 }
 0x302   : > { %2461 = vmatprep.mubr.bf16.mxu1 %v3376_v58 }
 0x309   : > { %2462 = vmatmul.mubr.bf16.gmra.mxu1 %v3378_v56 }
 0x30a   : > { %2469 = vmatprep.mubr.bf16.mxu1 %v3379_v16 }
 0x311   : > { %2470 = vmatmul.mubr.bf16.gmra.mxu1 %v3381_v18 }
 0x312   : > { %2477 = vmatprep.mubr.bf16.mxu1 %v3382_v7 }
 0x319   : > { %2478 = vmatmul.mubr.bf16.gmra.mxu1 %v3384_v23 }
 0x31a   : > { %2485 = vmatprep.mubr.bf16.mxu1 %v3385_v34 }
 0x321   : > { %2486 = vmatmul.mubr.bf16.gmra.mxu1 %v3387_v3 }
 0x322   : > { %2493 = vmatprep.mubr.bf16.mxu1 %v3388_v8 }
 0x329   : > { %2494 = vmatmul.mubr.bf16.gmra.mxu1 %v3390_v35 }
 0x371   : > { %v3018_v43 = vpop.f32.mrf.mxu1 }
 0x373   : > { %v3019_v39 = vpop.f32.mrf.mxu1 }
 0x374   : > { %v3020_v41 = vadd.f32 %v3019_v39, %v3018_v43 }
 0x375   : > { %v3021_v47 = vpop.f32.mrf.mxu1 }
 0x376   : > { %v2376_v38 = vadd.f32 %v3020_v41, %v2024_v24 }
 0x377   : > { %v3022_v62 = vpop.f32.mrf.mxu1 }
 0x378   : > { %v3023_v22 = vadd.f32 %v3022_v62, %v3021_v47  ;;  %v2502_v9 = vmax.f32 %v2376_v38, 0.0 }
 0x379   : > { %v3024_v55 = vpop.f32.mrf.mxu1 }
 0x37a   : > { %v2379_v10 = vadd.f32 %v3023_v22, %v2029_v0 }
 0x37b   : > { %v3025_v6 = vpop.f32.mrf.mxu1 }
 0x37c   : > { %v2503_v33 = vmax.f32 %v2379_v10, 0.0  ;;  %v3026_v59 = vadd.f32 %v3025_v6, %v3024_v55 }
 0x37d   : > { %v3027_v49 = vpop.f32.mrf.mxu1 }
 0x37e   : > { %v4505_v21 = vpack.c.bf16 %v2503_v33, %v2502_v9  ;;  %v2384_v4 = vadd.f32 %v3026_v59, %v2034_v42 }
 0x37f   : > { %v3028_v28 = vpop.f32.mrf.mxu1 }
 0x380   : > { %v3029_v12 = vadd.f32 %v3028_v28, %v3027_v49  ;;  %v2504_v19 = vmax.f32 %v2384_v4, 0.0 }
 0x381   : > { %v3030_v61 = vpop.f32.mrf.mxu1 }
 0x382   : > { %v2387_v15 = vadd.f32 %v3029_v12, %v2039_v25 }
 0x383   : > { %v3031_v54 = vpop.f32.mrf.mxu1 }
 0x384   : > { %v2505_v58 = vmax.f32 %v2387_v15, 0.0  ;;  %v3032_v56 = vadd.f32 %v3031_v54, %v3030_v61 }
 0x385   : > { %v3033_v16 = vpop.f32.mrf.mxu1 }
 0x386   : > { %v4507_v18 = vpack.c.bf16 %v2505_v58, %v2504_v19  ;;  %v2392_v23 = vadd.f32 %v3032_v56, %v2044_v40  ;;  %v4514_v40 = vld.sshfl [vmem:[%s4621_s9] sm:$0x33 pattern:$0x76325410] }
 0x387   : > { %v3034_v7 = vpop.f32.mrf.mxu1  ;;  %v2565_v9 = vcombine.high %v4514_v40, %v4514_v40 }
 0x388   : > { %v3035_v34 = vadd.f32 %v3034_v7, %v3033_v16  ;;  %v2506_v43 = vmax.f32 %v2392_v23, 0.0 }
 0x389   : > { %v3036_v3 = vpop.f32.mrf.mxu1  ;;  %2600 = vmatprep.mubr.bf16.mxu0 %v2565_v9 }
 0x38a   : > { %v2395_v8 = vadd.f32 %v3035_v34, %v2049_v13 }
 0x38b   : > { %v3037_v35 = vpop.f32.mrf.mxu1 }
 0x38c   : > { %v2507_v39 = vmax.f32 %v2395_v8, 0.0  ;;  %v3038_v41 = vadd.f32 %v3037_v35, %v3036_v3 }
 0x38d   : > { %v3039_v42 = vpop.f32.mrf.mxu1 }
 0x38e   : > { %v4509_v47 = vpack.c.bf16 %v2507_v39, %v2506_v43  ;;  %v2400_v24 = vadd.f32 %v3038_v41, %v2054_v48 }
 0x38f   : > { %v3040_v25 = vpop.f32.mrf.mxu1 }
 0x390   : > { %v3041_v62 = vadd.f32 %v3040_v25, %v3039_v42  ;;  %v2508_v55 = vmax.f32 %v2400_v24, 0.0 }
 0x391   : > { %v3042_v38 = vpop.f32.mrf.mxu1 }
 0x392   : > { %v2403_v22 = vadd.f32 %v3041_v62, %v2059_v63 }
 0x393   : > { %v3043_v0 = vpop.f32.mrf.mxu1 }
 0x394   : > { %v2509_v10 = vmax.f32 %v2403_v22, 0.0  ;;  %v3044_v6 = vadd.f32 %v3043_v0, %v3042_v38 }
 0x395   : > { %v3045_v13 = vpop.f32.mrf.mxu1 }
 0x396   : > { %v4518_v33 = vpack.c.bf16 %v2509_v10, %v2508_v55  ;;  %v2408_v48 = vadd.f32 %v3044_v6, %v4485_v60 }
 0x397   : > { %v3046_v59 = vpop.f32.mrf.mxu1 }
 0x398   : > { %v3047_v63 = vadd.f32 %v3046_v59, %v3045_v13  ;;  %v2510_v12 = vmax.f32 %v2408_v48, 0.0 }
 0x399   : > { %v3048_v49 = vpop.f32.mrf.mxu1 }
 0x39a   : > { %v2411_v28 = vadd.f32 %v3047_v63, %v4487_v2 }
 0x39b   : > { %v3049_v4 = vpop.f32.mrf.mxu1 }
 0x39c   : > { %v2511_v61 = vmax.f32 %v2411_v28, 0.0  ;;  %v3050_v15 = vadd.f32 %v3049_v4, %v3048_v49 }
 0x39d   : > { %v3051_v54 = vpop.f32.mrf.mxu1 }
 0x39e   : > { %v4522_v19 = vpack.c.bf16 %v2511_v61, %v2510_v12  ;;  %v2416_v56 = vadd.f32 %v3050_v15, %v4477_v5 }
 0x39f   : > { %v3052_v58 = vpop.f32.mrf.mxu1 }
 0x3a0   : > { %v3053_v16 = vadd.f32 %v3052_v58, %v3051_v54  ;;  %v2512_v60 = vmax.f32 %v2416_v56, 0.0 }
 0x3a1   : > { %v3054_v7 = vpop.f32.mrf.mxu1 }
 0x3a2   : > { %v2419_v23 = vadd.f32 %v3053_v16, %v4479_v52 }
 0x3a3   : > { %v3055_v34 = vpop.f32.mrf.mxu1 }
 0x3a4   : > { %v2513_v3 = vmax.f32 %v2419_v23, 0.0  ;;  %v3056_v8 = vadd.f32 %v3055_v34, %v3054_v7 }
 0x3a5   : > { %v3057_v35 = vpop.f32.mrf.mxu1 }
 0x3a6   : > { %v4526_v2 = vpack.c.bf16 %v2513_v3, %v2512_v60  ;;  %v2424_v39 = vadd.f32 %v3056_v8, %v4469_v45 }
 0x3a7   : > { %v3058_v43 = vpop.f32.mrf.mxu1 }
 0x3a8   : > { %v3059_v41 = vadd.f32 %v3058_v43, %v3057_v35  ;;  %v2514_v5 = vmax.f32 %v2424_v39, 0.0 }
 0x3a9   : > { %v3060_v42 = vpop.f32.mrf.mxu1 }
 0x3aa   : > { %v2427_v25 = vadd.f32 %v3059_v41, %v4471_v46 }
 0x3ab   : > { %v3061_v24 = vpop.f32.mrf.mxu1 }
 0x3ac   : > { %v2515_v62 = vmax.f32 %v2427_v25, 0.0  ;;  %v3062_v38 = vadd.f32 %v3061_v24, %v3060_v42 }
 0x3ad   : > { %v3063_v22 = vpop.f32.mrf.mxu1 }
 0x3ae   : > { %v4530_v52 = vpack.c.bf16 %v2515_v62, %v2514_v5  ;;  %v2432_v55 = vadd.f32 %v3062_v38, %v4458_v30 }
 0x3af   : > { %v3064_v0 = vpop.f32.mrf.mxu1 }
 0x3b0   : > { %v3065_v10 = vadd.f32 %v3064_v0, %v3063_v22  ;;  %v2516_v45 = vmax.f32 %v2432_v55, 0.0 }
 0x3b1   : > { %v3066_v6 = vpop.f32.mrf.mxu1 }
 0x3b2   : > { %v2435_v13 = vadd.f32 %v3065_v10, %v4460_v32 }
 0x3b3   : > { %v3067_v9 = vpop.f32.mrf.mxu1 }
 0x3b4   : > { %v2517_v59 = vmax.f32 %v2435_v13, 0.0  ;;  %v3068_v48 = vadd.f32 %v3067_v9, %v3066_v6 }
 0x3b5   : > { %v3069_v63 = vpop.f32.mrf.mxu1 }
 0x3b6   : > { %v4534_v46 = vpack.c.bf16 %v2517_v59, %v2516_v45  ;;  %v2440_v28 = vadd.f32 %v3068_v48, %v4501_v53 }
 0x3b7   : > { %v3070_v49 = vpop.f32.mrf.mxu1 }
 0x3b8   : > { %v3071_v4 = vadd.f32 %v3070_v49, %v3069_v63  ;;  %v2518_v30 = vmax.f32 %v2440_v28, 0.0 }
 0x3b9   : > { %v3072_v12 = vpop.f32.mrf.mxu1 }
 0x3ba   : > { %v2443_v61 = vadd.f32 %v3071_v4, %v4503_v51 }
 0x3bb   : > { %v3073_v15 = vpop.f32.mrf.mxu1 }
 0x3bc   : > { %v2519_v54 = vmax.f32 %v2443_v61, 0.0  ;;  %v3074_v58 = vadd.f32 %v3073_v15, %v3072_v12 }
 0x3bd   : > { %v3075_v56 = vpop.f32.mrf.mxu1 }
 0x3be   : > { %v4538_v32 = vpack.c.bf16 %v2519_v54, %v2518_v30  ;;  %v2448_v7 = vadd.f32 %v3074_v58, %v4497_v31 }
 0x3bf   : > { %v3076_v16 = vpop.f32.mrf.mxu1 }
 0x3c0   : > { %v3077_v23 = vadd.f32 %v3076_v16, %v3075_v56  ;;  %v2520_v53 = vmax.f32 %v2448_v7, 0.0 }
 0x3c1   : > { %v3078_v34 = vpop.f32.mrf.mxu1 }
 0x3c2   : > { %v2451_v60 = vadd.f32 %v3077_v23, %v4499_v44 }
 0x3c3   : > { %v3079_v3 = vpop.f32.mrf.mxu1 }
 0x3c4   : > { %v2521_v8 = vmax.f32 %v2451_v60, 0.0 }
 0x3c5   : > { %v3081_v35 = vpop.f32.mrf.mxu1 }
 0x3c6   : > { %v4542_v43 = vpack.c.bf16 %v2521_v8, %v2520_v53 }
 0x3c7   : > { %v3082_v51 = vpop.f32.mrf.mxu1 }
 0x3c9   : > { %v3084_v39 = vpop.f32.mrf.mxu1 }
 0x3cb   : > { %v3085_v41 = vpop.f32.mrf.mxu1 }
 0x3cd   : > { %v3087_v42 = vpop.f32.mrf.mxu1 }
 0x3cf   : > { %v3088_v25 = vpop.f32.mrf.mxu1 }
 0x3d1   : > { %v3090_v24 = vpop.f32.mrf.mxu1 }
 0x3d3   : > { %v3091_v5 = vpop.f32.mrf.mxu1 }
 0x3d4   : > { %v3092_v53 = vadd.f32 %v3091_v5, %v3090_v24 }
 0x3d5   : > { %v3093_v62 = vpop.f32.mrf.mxu1 }
 0x3d7   : > { %v3094_v38 = vpop.f32.mrf.mxu1 }
 0x3d8   : > { %v3095_v56 = vadd.f32 %v3094_v38, %v3093_v62  ;;  %v3083_v62 = vadd.f32 %v3082_v51, %v3081_v35 }
 0x3d9   : > { %v3096_v31 = vpop.f32.mrf.mxu1 }
 0x3da   : > { %v2459_v38 = vadd.f32 %v3083_v62, %v4495_v57 }
 0x3db   : > { %v3097_v22 = vpop.f32.mrf.mxu1 }
 0x3dc   : > { %v3098_v30 = vadd.f32 %v3097_v22, %v3096_v31 }
 0x3dd   : > { %v3099_v0 = vpop.f32.mrf.mxu1 }
 0x3de   : > { %v2480_v8 = vadd.f32 %v3098_v30, %v4473_v50 }
 0x3df   : > { %v3100_v55 = vpop.f32.mrf.mxu1 }
 0x3e0   : > { %v3101_v4 = vadd.f32 %v3100_v55, %v3099_v0 }
 0x3e1   : > { %v3102_v44 = vpop.f32.mrf.mxu1 }
 0x3e2   : > { %v2483_v16 = vadd.f32 %v3101_v4, %v4475_v1  ;;  %v2528_v1 = vmax.f32 %v2480_v8, 0.0 }
 0x3e3   : > { %v3103_v10 = vpop.f32.mrf.mxu1 }
 0x3e4   : > { %v3104_v49 = vadd.f32 %v3103_v10, %v3102_v44  ;;  %v2529_v44 = vmax.f32 %v2483_v16, 0.0 }
 0x3e5   : > { %v3105_v6 = vpop.f32.mrf.mxu1 }
 0x3e6   : > { %v2488_v54 = vadd.f32 %v3104_v49, %v4465_v14  ;;  %v2472_v14 = vadd.f32 %v3092_v53, %v4481_v11  ;;  %v2548_v50 = vpack.c.bf16 %v2529_v44, %v2528_v1 }
 0x3e7   : > { %v3106_v13 = vpop.f32.mrf.mxu1 }
 0x3e8   : > { %v3107_v59 = vadd.f32 %v3106_v13, %v3105_v6  ;;  %v2530_v0 = vmax.f32 %v2488_v54, 0.0 }
 0x3e9   : > { %v3108_v9 = vpop.f32.mrf.mxu1 }
 0x3ea   : > { %v2491_v12 = vadd.f32 %v3107_v59, %v4467_v36  ;;  %v3089_v36 = vadd.f32 %v3088_v25, %v3087_v42  ;;  %v3080_v42 = vadd.f32 %v3079_v3, %v3078_v34  ;;  %v2526_v25 = vmax.f32 %v2472_v14, 0.0 }
 0x3eb   : > { %v3109_v45 = vpop.f32.mrf.mxu1 }
 0x3ec   : > { %v3110_v48 = vadd.f32 %v3109_v45, %v3108_v9  ;;  %v2531_v7 = vmax.f32 %v2491_v12, 0.0  ;;  %v2467_v24 = vadd.f32 %v3089_v36, %v4491_v17  ;;  %v2456_v11 = vadd.f32 %v3080_v42, %v4493_v20 }
 0x3ed   : > { %v3111_v63 = vpop.f32.mrf.mxu1  ;;  %v2523_v17 = vmax.f32 %v2459_v38, 0.0 }
 0x3ee   : > { %v2496_v61 = vadd.f32 %v3110_v48, %v4448_v26  ;;  %v2475_v26 = vadd.f32 %v3095_v56, %v4483_v37  ;;  %v2549_v31 = vpack.c.bf16 %v2531_v7, %v2530_v0 }
 0x3ef   : > { %v3112_v28 = vpop.f32.mrf.mxu1 }
 0x3f0   : > { %v3113_v15 = vadd.f32 %v3112_v28, %v3111_v63  ;;  %v2532_v23 = vmax.f32 %v2496_v61, 0.0  ;;  %v2527_v5 = vmax.f32 %v2475_v26, 0.0 }
 0x3f2   : > { %v2499_v58 = vadd.f32 %v3113_v15, %v4456_v27  ;;  %v3086_v27 = vadd.f32 %v3085_v41, %v3084_v39  ;;  %v2547_v39 = vpack.c.bf16 %v2527_v5, %v2526_v25 }
 0x3f4   : > { %v2533_v60 = vmax.f32 %v2499_v58, 0.0  ;;  %v2464_v37 = vadd.f32 %v3086_v27, %v4489_v29 }
 0x3f6   : > { %v2550_v55 = vpack.c.bf16 %v2533_v60, %v2532_v23  ;;  %v2524_v35 = vmax.f32 %v2464_v37, 0.0 }
 0x3f8   : > { %3114 = vmatprep.subr.bf16.mxu0 %v2550_v55 }
 0x3f9   : > { %3115 = vmatpush3.bf16.msra.mxu0 %v4534_v46  ;;  %v2525_v46 = vmax.f32 %v2467_v24, 0.0 }
 0x3fa   : > { %3116 = vmatprep.subr.bf16.mxu0 %v2549_v31 }
 0x3fb   : > { %v2546_v51 = vpack.c.bf16 %v2525_v46, %v2524_v35 }
 0x3fd   : > { %3117 = vmatpush3.bf16.msra.mxu0 %v4530_v52  ;;  %v2522_v52 = vmax.f32 %v2456_v11, 0.0 }
 0x3fe   : > { %3118 = vmatprep.subr.bf16.mxu0 %v2548_v50 }
 0x3ff   : > { %v2545_v29 = vpack.c.bf16 %v2523_v17, %v2522_v52 }
 0x401   : > { %3119 = vmatpush3.bf16.msra.mxu0 %v4526_v2 }
 0x402   : > { %3120 = vmatprep.subr.bf16.mxu0 %v2547_v39 }
 0x405   : > { %3121 = vmatpush3.bf16.msra.mxu0 %v4522_v19 }
 0x406   : > { %3122 = vmatprep.subr.bf16.mxu0 %v2546_v51 }
 0x409   : > { %3123 = vmatpush3.bf16.msra.mxu0 %v4518_v33 }
 0x40a   : > { %3124 = vmatprep.subr.bf16.mxu0 %v2545_v29 }
 0x40d   : > { %3125 = vmatpush3.bf16.msra.mxu0 %v4509_v47  ;;  %v2555_v47 = vpop.permute.xlu0 %2554 }
 0x40e   : > { %3126 = vmatprep.subr.bf16.mxu0 %v4542_v43 }
 0x411   : > { %3127 = vmatpush3.bf16.msra.mxu0 %v4507_v18 }
 0x412   : > { %3128 = vmatprep.subr.bf16.mxu0 %v4538_v32 }
 0x415   : > { %3129 = vmatpush3.bf16.msra.mxu0 %v4505_v21 }
 0x418   : > { %2601 = vmatmul.mubr.bf16.vlgmr.msra.gmra.mxu0 %v4514_v40 }
 0x4d8   : > { %v3130_v20 = vpop.f32.mrf.mxu0 }
 0x4da   : > { %v3131_v57 = vpop.f32.mrf.mxu0 }
 0x4db   : > { %v3132_v33 = vadd.f32 %v3131_v57, %v3130_v20 }
 0x4dc   : > { %v3133_v19 = vpop.f32.mrf.mxu0 }
 0x4dd   : > { %v2603_v2 = vadd.f32 %v3132_v33, %v2555_v47 }
 0x4de   : > { %v3134_v21 = vpop.f32.mrf.mxu0 }
 0x4df   : > { %2608 = vst [vmem:[%s422_s13] sm:$0xf] %v2603_v2 }
 0x4e0   : > { %3404 = shalt.err (!%p3401_p5)
}
 0x4e1   : > { %s3405_s24 = scalar_lea.hbm %s4572_s14, 64  ;;  %s3409_s12 = scalar_lea.hbm %s4623_s11, 128 }
 0x4e2   : > { %p3406_p6 = scmp.ne.s32.totalorder %s4572_s14, %s3405_s24  ;;  %p3410_p10 = scmp.lt.s32.totalorder %s4572_s14, %s4623_s11 }
 0x4e3   : > { %p3411_p11 = scmp.lt.s32.totalorder %s3409_s12, %s3405_s24 }
 0x4e4   : > { %p3407_p7 = pnand %p3406_p6, %p3571_p4 }
 0x4e5   : > { %p3412_p12 = por %p3411_p11, %p3410_p10 }
 0x4e6   : > { %p3408_p9 = pneg %p3407_p7 }
 0x4e8   : > { %p3413_p13 = pnand %p3412_p12, %p3408_p9 }
 0x4ea   : > { %3416 = shalt.err (!%p3413_p13)
}
 0x4eb   : > { %3205 = dma.vmem_to_hbm [thread:$0]  (%p3571_p4), %s2625_s25, 64, %s4572_s14, %s2610_s15  }
 0x4ec PF: > { %p3211_p0 = scmp.ge.s32.totalorder %s3467_s22, 2  ;;  %s2636_s30 = sand.u32 1, %s3447_s17  }
 0x4ed   : > { %s2637_s19 = scalar_lea.sflag [#allocation3], %s2636_s30 }
 0x4ee   : > { %p3208_p1 = pnand %p3211_p0, %p3578_p8 }
 0x4f0   : > { %p3209_p2 = pneg %p3208_p1 }
 0x4f2   : > { %3442 = dma.done.wait (%p3209_p2), %s2637_s19, 64  }
 0x4f3   : > { %3444 = vsyncadd (%p3209_p2), %s2637_s19, 4294967232  ;;  %s24_s22 = sadd.s32 1, %s3467_s22   ;;  %s4677_s20 = sld [smem:[#allocation5_spill]] }
 0x4f4   : > { %p21_p3 = scmp.ge.s32.totalorder %s24_s22, 4   ;;  %s4678_s19 = sld [smem:[#allocation8_spill]] }
 0x4f5   : > { %s4679_s27 = sld [smem:[#allocation6_spill]]  ;;  %s4681_s17 = smov %s3451_s18 }
 0x4f6   : > { %s4680_s21 = sld [smem:[#allocation7_spill]] }
 0x4f7   :  { %23 = sbr.rel (!%p21_p3) target bundleno = 4 (0x4), region = 102 }
 0x4f9   : > { %s4682_s18 = smov %s4677_s20 }
 0x4fb   : > { %s4683_s20 = smov %s4679_s27 }
 0x4fc   :  { %2642 = vsyncpa [#allocation3], 1 }
 0x4fd   :  { %2644 = vsyncpa [#allocation3 + $0x1], 1 }

</bundles_post_ra>
